<compile_context>
chip_gen: v6e
topology: v6e:2x2x1
jax: 0.10.0
libtpu: 0.0.40
codegen_flags: <defaults>
</compile_context>

<pallas_src>
import math
import functools

import jax
import jax.numpy as jnp
from jax import lax
from jax.experimental import pallas as pl
from jax.experimental.pallas import tpu as pltpu


def _mha_kernel(q_ref, k_ref, v_ref, mask_ref,
                wq_ref, wk_ref, wv_ref, wo_ref,
                o_ref, kf_ref, vf_ref, *, num_heads, d_k):
    dt = q_ref.dtype
    qi = pl.program_id(1)

    # ---- K/V projections: once per batch (query-tile axis is "arbitrary") ----
    @pl.when(qi == 0)
    def _():
        kf_ref[...] = jnp.dot(k_ref[...], wk_ref[...],
                              preferred_element_type=jnp.float32).astype(dt)
        vf_ref[...] = jnp.dot(v_ref[...], wv_ref[...],
                              preferred_element_type=jnp.float32).astype(dt)

    # ---- Q projection with 1/sqrt(d_k) folded in (once per tile, not per head) ----
    inv_sqrt_dk = jnp.float32(1.0 / math.sqrt(d_k))
    qf = (jnp.dot(q_ref[...], wq_ref[...], preferred_element_type=jnp.float32)
          * inv_sqrt_dk).astype(dt)                                   # (TQ, D)

    kf = kf_ref[...]                                                  # (S_kv, D)
    vf = vf_ref[...]                                                  # (S_kv, D)
    wo = wo_ref[...]                                                  # (D, D)

    # ---- Key mask computed once, hoisted out of the head loop ----
    masked = mask_ref[...] == 0                                       # (1, S_kv) bool

    tq = qf.shape[0]
    d_model = num_heads * d_k
    acc = jnp.zeros((tq, d_model), dtype=jnp.float32)

    # ---- Per-head attention; accumulate directly into the W_o product ----
    for h in range(num_heads):
        sl = slice(h * d_k, (h + 1) * d_k)
        qh = qf[:, sl]                                                # (TQ,   d_k)
        kh = kf[:, sl]                                                # (S_kv, d_k)
        vh = vf[:, sl]                                                # (S_kv, d_k)

        # scores = qh @ kh^T without materializing a transposed key slab.
        s = lax.dot_general(qh, kh, (((1,), (1,)), ((), ())),
                            preferred_element_type=jnp.float32)       # (TQ, S_kv)
        s = jnp.where(masked, jnp.float32(-1e9), s)                   # masked_fill_

        # Numerically stabilized softmax over keys.
        s = s - jnp.max(s, axis=-1, keepdims=True)
        p = jnp.exp(s)
        p = p * pl.reciprocal(jnp.sum(p, axis=-1, keepdims=True), approx=True)
        # TODO(synk): nn.Dropout on attention probabilities omitted (eval mode / p=0).

        hv = jnp.dot(p.astype(dt), vh, preferred_element_type=jnp.float32)   # (TQ, d_k)
        acc = acc + jnp.dot(hv.astype(dt), wo[sl, :],
                            preferred_element_type=jnp.float32)              # (TQ, D)

    o_ref[...] = acc.astype(o_ref.dtype)


def _round_up(x, m):
    return ((x + m - 1) // m) * m


def _vmem_capacity_bytes():
    """Physical per-core VMEM; falls back to the smallest generation (v7x, 64 MiB)."""
    try:
        cap = int(getattr(pltpu.get_tpu_info(), "vmem_capacity_bytes", 0))
        if cap > 0:
            return cap
    except Exception:
        pass
    return 64 * 1024 * 1024


def _choose_q_tile(s_q, s_kv, d, itemsize, budget_bytes):
    """Largest query tile (multiple of 8) whose VMEM working set fits the byte budget."""
    s_q8 = _round_up(s_q, 8)
    fixed = (2 * 2 * s_kv * d * itemsize      # double-buffered raw K / V input blocks
             + 2 * s_kv * d * itemsize        # projected K / V scratch (one copy each)
             + 4 * d * d * itemsize           # weights (single-buffered)
             + 4 * s_kv * 4)                  # mask blocks (int32)
    per_q_row = (2 * d * itemsize             # double-buffered Q block
                 + 2 * d * itemsize           # double-buffered output block
                 + 4 * s_kv * 4               # f32 scores / probs / mask temporaries
                 + 2 * d * 4)                 # f32 projected-Q + output accumulator
    cands = sorted({c for c in (8, 16, 32, 64, 128, 256, 512, 1024) if c <= s_q8}
                   | {min(s_q8, 1024)})
    best = cands[0]
    for c in cands:
        if fixed + c * per_q_row <= budget_bytes:
            best = c
    return best


def multi_head_attention(q, k, v, mask, wq_t, wk_t, wv_t, wo_t, num_heads, q_tile=None):
    B, S_q, D = q.shape
    S_kv = k.shape[1]
    assert D % num_heads == 0, "d_model is not divisible by h"
    d_k = D // num_heads
    itemsize = jnp.dtype(q.dtype).itemsize

    vmem_cap = _vmem_capacity_bytes()
    # Leave headroom for compiler-internal scratch: ~48 MiB on v7x, ~96 MiB on v5e/v6e.
    vmem_limit = min(int(vmem_cap * 0.75), 100 * 1024 * 1024)

    TQ = _choose_q_tile(S_q, S_kv, D, itemsize, int(0.85 * vmem_limit))
    if q_tile is not None:
        TQ = max(8, min(TQ, _round_up(q_tile, 8)))

    S_q_pad = _round_up(S_q, TQ)
    n_q_tiles = S_q_pad // TQ
    q_in = q if S_q_pad == S_q else jnp.pad(q, ((0, 0), (0, S_q_pad - S_q), (0, 0)))

    mask3 = mask.reshape(B, 1, S_kv).astype(jnp.int32)

    kernel = functools.partial(_mha_kernel, num_heads=num_heads, d_k=d_k)

    q_spec = pl.BlockSpec((None, TQ, D), lambda b, qi: (b, qi, 0))
    kv_spec = pl.BlockSpec((None, S_kv, D), lambda b, qi: (b, 0, 0))
    mask_spec = pl.BlockSpec((None, 1, S_kv), lambda b, qi: (b, 0, 0))
    out_spec = pl.BlockSpec((None, TQ, D), lambda b, qi: (b, qi, 0))

    def build(single_buffer_weights):
        w_kwargs = {"pipeline_mode": pl.Buffered(1)} if single_buffer_weights else {}
        w_spec = pl.BlockSpec((D, D), lambda b, qi: (0, 0), **w_kwargs)
        return pl.pallas_call(
            kernel,
            out_shape=jax.ShapeDtypeStruct((B, S_q_pad, D), q.dtype),
            grid_spec=pltpu.PrefetchScalarGridSpec(
                num_scalar_prefetch=0,
                grid=(B, n_q_tiles),
                in_specs=[q_spec, kv_spec, kv_spec, mask_spec,
                          w_spec, w_spec, w_spec, w_spec],
                out_specs=out_spec,
                scratch_shapes=[pltpu.VMEM((S_kv, D), q.dtype),   # projected K
                                pltpu.VMEM((S_kv, D), q.dtype)],  # projected V
            ),
            compiler_params=pltpu.CompilerParams(
                # Batch axis shards across TensorCores; the query-tile axis carries the
                # projected-K/V scratch, so it must stay sequential ("arbitrary").
                dimension_semantics=("parallel", "arbitrary"),
                vmem_limit_bytes=vmem_limit,
            ),
        )

    args = (q_in, k, v, mask3, wq_t, wk_t, wv_t, wo_t)
    try:
        out = build(True)(*args)
    except Exception:
        # pipeline_mode=pl.Buffered(1) unsupported on this jax version: fall back to
        # default double-buffered weights (identical results, just more VMEM).
        out = build(False)(*args)

    return out if S_q_pad == S_q else out[:, :S_q, :]


def reference_mha(q, k, v, mask, wq_t, wk_t, wv_t, wo_t, num_heads):
    B, S_q, D = q.shape
    S_kv = k.shape[1]
    d_k = D // num_heads
    Q = (q @ wq_t).reshape(B, S_q, num_heads, d_k).transpose(0, 2, 1, 3)
    K = (k @ wk_t).reshape(B, S_kv, num_heads, d_k).transpose(0, 2, 1, 3)
    V = (v @ wv_t).reshape(B, S_kv, num_heads, d_k).transpose(0, 2, 1, 3)
    scores = Q @ K.transpose(0, 1, 3, 2) / math.sqrt(d_k)
    scores = jnp.where(mask[:, None, None, :] == 0, -1e9, scores)
    p = jax.nn.softmax(scores, axis=-1)
    x = (p @ V).transpose(0, 2, 1, 3).reshape(B, S_q, D)
    return x @ wo_t


if __name__ == "__main__":
    def run_case(B, S_q, S_kv, D, H, q_tile=None, n_masked=2):
        key = jax.random.PRNGKey(0)
        kq, kk, kv_, kwq, kwk, kwv, kwo = jax.random.split(key, 7)
        q = jax.random.normal(kq, (B, S_q, D), dtype=jnp.float32)
        k = jax.random.normal(kk, (B, S_kv, D), dtype=jnp.float32)
        v = jax.random.normal(kv_, (B, S_kv, D), dtype=jnp.float32)

        # nn.Linear(d_model, d_model, bias=False): y = x @ W^T. We store W^T directly.
        scale = 1.0 / math.sqrt(D)
        wq_t = jax.random.uniform(kwq, (D, D), minval=-scale, maxval=scale, dtype=jnp.float32)
        wk_t = jax.random.uniform(kwk, (D, D), minval=-scale, maxval=scale, dtype=jnp.float32)
        wv_t = jax.random.uniform(kwv, (D, D), minval=-scale, maxval=scale, dtype=jnp.float32)
        wo_t = jax.random.uniform(kwo, (D, D), minval=-scale, maxval=scale, dtype=jnp.float32)

        # Key-padding mask: last batch has its trailing n_masked key positions masked.
        mask = jnp.ones((B, S_kv), dtype=jnp.float32)
        mask = mask.at[B - 1, S_kv - n_masked:].set(0.0)

        out = multi_head_attention(q, k, v, mask, wq_t, wk_t, wv_t, wo_t, H, q_tile=q_tile)
        out = jax.block_until_ready(out)

        ref = reference_mha(q, k, v, mask, wq_t, wk_t, wv_t, wo_t, H)
        assert out.shape == ref.shape, (out.shape, ref.shape)
        max_err = jnp.max(jnp.abs(out - ref))
        # Tolerance slightly loose: softmax denominator uses the EUP approx reciprocal.
        assert jnp.allclose(out, ref, atol=2e-3, rtol=2e-3), f"max abs err = {max_err}"

    # Small primary case (toy size of the module): d_k = 8.
    run_case(B=2, S_q=8, S_kv=8, D=32, H=4)
    # Multi-tile case: exercises per-batch K/V projection scratch reuse (qi > 0),
    # query padding (200 -> 256 with TQ=128), and a key length != query length.
    run_case(B=2, S_q=200, S_kv=192, D=128, H=4, q_tile=128, n_masked=5)

    print("KERNEL_OK")
</pallas_src>

<mosaic_0001>
module attributes {stable_mosaic.version = 11 : i64} {
  func.func @_mha_kernel(%arg0: i32, %arg1: i32, %arg2: memref<1x8x32xf32, #tpu.memory_space<vmem>>, %arg3: memref<1x8x32xf32, #tpu.memory_space<vmem>>, %arg4: memref<1x8x32xf32, #tpu.memory_space<vmem>>, %arg5: memref<1x1x8xi32, #tpu.memory_space<vmem>>, %arg6: memref<32x32xf32, #tpu.memory_space<vmem>>, %arg7: memref<32x32xf32, #tpu.memory_space<vmem>>, %arg8: memref<32x32xf32, #tpu.memory_space<vmem>>, %arg9: memref<32x32xf32, #tpu.memory_space<vmem>>, %arg10: memref<1x8x32xf32, #tpu.memory_space<vmem>>, %arg11: memref<8x32xf32, #tpu.memory_space<vmem>>, %arg12: memref<8x32xf32, #tpu.memory_space<vmem>>) attributes {dimension_semantics = [#tpu.dimension_semantics<parallel>, #tpu.dimension_semantics<arbitrary>], iteration_bounds = array<i64: 2, 1>, scalar_prefetch = 0 : i64, scratch_operands = 2 : i64, tpu.core_type = #tpu.core_type<tc>, window_params = [{transform_indices = @transform_0, window_bounds = array<i64: 1, 8, 32>}, {transform_indices = @transform_1, window_bounds = array<i64: 1, 8, 32>}, {transform_indices = @transform_2, window_bounds = array<i64: 1, 8, 32>}, {transform_indices = @transform_3, window_bounds = array<i64: 1, 1, 8>}, {pipeline_mode = #tpu.pipeline_mode<synchronous>, transform_indices = @transform_4, window_bounds = array<i64: 32, 32>}, {pipeline_mode = #tpu.pipeline_mode<synchronous>, transform_indices = @transform_5, window_bounds = array<i64: 32, 32>}, {pipeline_mode = #tpu.pipeline_mode<synchronous>, transform_indices = @transform_6, window_bounds = array<i64: 32, 32>}, {pipeline_mode = #tpu.pipeline_mode<synchronous>, transform_indices = @transform_7, window_bounds = array<i64: 32, 32>}, {transform_indices = @transform_8, window_bounds = array<i64: 1, 8, 32>}]} {
    %c0_i32 = arith.constant 0 : i32
    %0 = arith.cmpi eq, %arg1, %c0_i32 : i32
    %1 = arith.extui %0 : i1 to i32
    %c0_i32_0 = arith.constant 0 : i32
    %2 = arith.cmpi ne, %1, %c0_i32_0 : i32
    scf.if %2 {
      %c0_44 = arith.constant 0 : index
      %c0_45 = arith.constant 0 : index
      %c0_46 = arith.constant 0 : index
      %108 = vector.load %arg3[%c0_44, %c0_45, %c0_46] : memref<1x8x32xf32, #tpu.memory_space<vmem>>, vector<1x8x32xf32>
      %109 = vector.shape_cast %108 : vector<1x8x32xf32> to vector<8x32xf32>
      %c0_47 = arith.constant 0 : index
      %c0_48 = arith.constant 0 : index
      %110 = vector.load %arg7[%c0_47, %c0_48] : memref<32x32xf32, #tpu.memory_space<vmem>>, vector<32x32xf32>
      %cst_49 = arith.constant dense<0.000000e+00> : vector<8x32xf32>
      %111 = tpu.matmul %109, %110, %cst_49 {dimension_numbers = #tpu.dot_dimension_numbers<[1], [0], [0], [1], [0, 0, 1, 1], [], []>} : vector<8x32xf32>, vector<32x32xf32>, vector<8x32xf32> -> vector<8x32xf32>
      %c0_50 = arith.constant 0 : index
      %c0_51 = arith.constant 0 : index
      %112 = vector.load %arg11[%c0_50, %c0_51] : memref<8x32xf32, #tpu.memory_space<vmem>>, vector<8x32xf32>
      tpu.vector_store %arg11[%c0_50, %c0_51], %111 {strides = array<i32>} : memref<8x32xf32, #tpu.memory_space<vmem>>, vector<8x32xf32>,
      %c0_52 = arith.constant 0 : index
      %c0_53 = arith.constant 0 : index
      %c0_54 = arith.constant 0 : index
      %113 = vector.load %arg4[%c0_52, %c0_53, %c0_54] : memref<1x8x32xf32, #tpu.memory_space<vmem>>, vector<1x8x32xf32>
      %114 = vector.shape_cast %113 : vector<1x8x32xf32> to vector<8x32xf32>
      %c0_55 = arith.constant 0 : index
      %c0_56 = arith.constant 0 : index
      %115 = vector.load %arg8[%c0_55, %c0_56] : memref<32x32xf32, #tpu.memory_space<vmem>>, vector<32x32xf32>
      %cst_57 = arith.constant dense<0.000000e+00> : vector<8x32xf32>
      %116 = tpu.matmul %114, %115, %cst_57 {dimension_numbers = #tpu.dot_dimension_numbers<[1], [0], [0], [1], [0, 0, 1, 1], [], []>} : vector<8x32xf32>, vector<32x32xf32>, vector<8x32xf32> -> vector<8x32xf32>
      %c0_58 = arith.constant 0 : index
      %c0_59 = arith.constant 0 : index
      %117 = vector.load %arg12[%c0_58, %c0_59] : memref<8x32xf32, #tpu.memory_space<vmem>>, vector<8x32xf32>
      tpu.vector_store %arg12[%c0_58, %c0_59], %116 {strides = array<i32>} : memref<8x32xf32, #tpu.memory_space<vmem>>, vector<8x32xf32>,
    } else {
    }
    %c0 = arith.constant 0 : index
    %c0_1 = arith.constant 0 : index
    %c0_2 = arith.constant 0 : index
    %3 = vector.load %arg2[%c0, %c0_1, %c0_2] : memref<1x8x32xf32, #tpu.memory_space<vmem>>, vector<1x8x32xf32>
    %4 = vector.shape_cast %3 : vector<1x8x32xf32> to vector<8x32xf32>
    %c0_3 = arith.constant 0 : index
    %c0_4 = arith.constant 0 : index
    %5 = vector.load %arg6[%c0_3, %c0_4] : memref<32x32xf32, #tpu.memory_space<vmem>>, vector<32x32xf32>
    %cst = arith.constant dense<0.000000e+00> : vector<8x32xf32>
    %6 = tpu.matmul %4, %5, %cst {dimension_numbers = #tpu.dot_dimension_numbers<[1], [0], [0], [1], [0, 0, 1, 1], [], []>} : vector<8x32xf32>, vector<32x32xf32>, vector<8x32xf32> -> vector<8x32xf32>
    %cst_5 = arith.constant 0.353553385 : f32
    %7 = vector.broadcast %cst_5 : f32 to vector<8x32xf32>
    %8 = arith.mulf %6, %7 : vector<8x32xf32>
    %c0_6 = arith.constant 0 : index
    %c0_7 = arith.constant 0 : index
    %9 = vector.load %arg11[%c0_6, %c0_7] : memref<8x32xf32, #tpu.memory_space<vmem>>, vector<8x32xf32>
    %c0_8 = arith.constant 0 : index
    %c0_9 = arith.constant 0 : index
    %10 = vector.load %arg12[%c0_8, %c0_9] : memref<8x32xf32, #tpu.memory_space<vmem>>, vector<8x32xf32>
    %c0_10 = arith.constant 0 : index
    %c0_11 = arith.constant 0 : index
    %11 = vector.load %arg9[%c0_10, %c0_11] : memref<32x32xf32, #tpu.memory_space<vmem>>, vector<32x32xf32>
    %c0_12 = arith.constant 0 : index
    %c0_13 = arith.constant 0 : index
    %c0_14 = arith.constant 0 : index
    %12 = vector.load %arg5[%c0_12, %c0_13, %c0_14] : memref<1x1x8xi32, #tpu.memory_space<vmem>>, vector<1x1x8xi32>
    %13 = vector.shape_cast %12 : vector<1x1x8xi32> to vector<1x8xi32>
    %c0_i32_15 = arith.constant 0 : i32
    %14 = vector.broadcast %c0_i32_15 : i32 to vector<1x8xi32>
    %15 = arith.cmpi eq, %13, %14 : vector<1x8xi32>
    %cst_16 = arith.constant 0.000000e+00 : f32
    %16 = vector.broadcast %cst_16 : f32 to vector<8x32xf32>
    %17 = vector.extract_strided_slice %8 {offsets = [0, 0], sizes = [8, 8], strides = [1, 1]} : vector<8x32xf32> to vector<8x8xf32>
    %18 = vector.extract_strided_slice %9 {offsets = [0, 0], sizes = [8, 8], strides = [1, 1]} : vector<8x32xf32> to vector<8x8xf32>
    %19 = vector.extract_strided_slice %10 {offsets = [0, 0], sizes = [8, 8], strides = [1, 1]} : vector<8x32xf32> to vector<8x8xf32>
    %cst_17 = arith.constant dense<0.000000e+00> : vector<8x8xf32>
    %20 = tpu.matmul %17, %18, %cst_17 {dimension_numbers = #tpu.dot_dimension_numbers<[1], [1], [0], [0], [0, 0, 1, 0], [], []>} : vector<8x8xf32>, vector<8x8xf32>, vector<8x8xf32> -> vector<8x8xf32>
    %cst_18 = arith.constant -1.000000e+09 : f32
    %21 = vector.shape_cast %15 : vector<1x8xi1> to vector<1x8xi1>
    %22 = vector.broadcast %21 : vector<1x8xi1> to vector<8x8xi1>
    %23 = vector.broadcast %cst_18 : f32 to vector<8x8xf32>
    %24 = arith.select %22, %23, %20 : vector<8x8xi1>, vector<8x8xf32>
    %cst_19 = arith.constant dense<0xFF800000> : vector<8xf32>
    %25 = vector.multi_reduction <maximumf>, %24, %cst_19 [1] : vector<8x8xf32> to vector<8xf32>
    %26 = vector.shape_cast %25 : vector<8xf32> to vector<8x1xf32>
    %27 = vector.broadcast %26 : vector<8x1xf32> to vector<8x8xf32>
    %28 = arith.subf %24, %27 : vector<8x8xf32>
    %29 = math.exp %28 : vector<8x8xf32>
    %cst_20 = arith.constant dense<0.000000e+00> : vector<8xf32>
    %30 = vector.multi_reduction <add>, %29, %cst_20 [1] : vector<8x8xf32> to vector<8xf32>
    %31 = vector.shape_cast %30 : vector<8xf32> to vector<8x1xf32>
    %32 = tpu.reciprocal %31 {approx = true} : vector<8x1xf32> -> vector<8x1xf32>
    %33 = vector.broadcast %32 : vector<8x1xf32> to vector<8x8xf32>
    %34 = arith.mulf %29, %33 : vector<8x8xf32>
    %cst_21 = arith.constant dense<0.000000e+00> : vector<8x8xf32>
    %35 = tpu.matmul %34, %19, %cst_21 {dimension_numbers = #tpu.dot_dimension_numbers<[1], [0], [0], [1], [0, 0, 1, 1], [], []>} : vector<8x8xf32>, vector<8x8xf32>, vector<8x8xf32> -> vector<8x8xf32>
    %36 = vector.extract_strided_slice %11 {offsets = [0, 0], sizes = [8, 32], strides = [1, 1]} : vector<32x32xf32> to vector<8x32xf32>
    %cst_22 = arith.constant dense<0.000000e+00> : vector<8x32xf32>
    %37 = tpu.matmul %35, %36, %cst_22 {dimension_numbers = #tpu.dot_dimension_numbers<[1], [0], [0], [1], [0, 0, 1, 1], [], []>} : vector<8x8xf32>, vector<8x32xf32>, vector<8x32xf32> -> vector<8x32xf32>
    %38 = arith.addf %16, %37 : vector<8x32xf32>
    %39 = vector.extract_strided_slice %8 {offsets = [0, 8], sizes = [8, 8], strides = [1, 1]} : vector<8x32xf32> to vector<8x8xf32>
    %40 = vector.extract_strided_slice %9 {offsets = [0, 8], sizes = [8, 8], strides = [1, 1]} : vector<8x32xf32> to vector<8x8xf32>
    %41 = vector.extract_strided_slice %10 {offsets = [0, 8], sizes = [8, 8], strides = [1, 1]} : vector<8x32xf32> to vector<8x8xf32>
    %cst_23 = arith.constant dense<0.000000e+00> : vector<8x8xf32>
    %42 = tpu.matmul %39, %40, %cst_23 {dimension_numbers = #tpu.dot_dimension_numbers<[1], [1], [0], [0], [0, 0, 1, 0], [], []>} : vector<8x8xf32>, vector<8x8xf32>, vector<8x8xf32> -> vector<8x8xf32>
    %cst_24 = arith.constant -1.000000e+09 : f32
    %43 = vector.shape_cast %15 : vector<1x8xi1> to vector<1x8xi1>
    %44 = vector.broadcast %43 : vector<1x8xi1> to vector<8x8xi1>
    %45 = vector.broadcast %cst_24 : f32 to vector<8x8xf32>
    %46 = arith.select %44, %45, %42 : vector<8x8xi1>, vector<8x8xf32>
    %cst_25 = arith.constant dense<0xFF800000> : vector<8xf32>
    %47 = vector.multi_reduction <maximumf>, %46, %cst_25 [1] : vector<8x8xf32> to vector<8xf32>
    %48 = vector.shape_cast %47 : vector<8xf32> to vector<8x1xf32>
    %49 = vector.broadcast %48 : vector<8x1xf32> to vector<8x8xf32>
    %50 = arith.subf %46, %49 : vector<8x8xf32>
    %51 = math.exp %50 : vector<8x8xf32>
    %cst_26 = arith.constant dense<0.000000e+00> : vector<8xf32>
    %52 = vector.multi_reduction <add>, %51, %cst_26 [1] : vector<8x8xf32> to vector<8xf32>
    %53 = vector.shape_cast %52 : vector<8xf32> to vector<8x1xf32>
    %54 = tpu.reciprocal %53 {approx = true} : vector<8x1xf32> -> vector<8x1xf32>
    %55 = vector.broadcast %54 : vector<8x1xf32> to vector<8x8xf32>
    %56 = arith.mulf %51, %55 : vector<8x8xf32>
    %cst_27 = arith.constant dense<0.000000e+00> : vector<8x8xf32>
    %57 = tpu.matmul %56, %41, %cst_27 {dimension_numbers = #tpu.dot_dimension_numbers<[1], [0], [0], [1], [0, 0, 1, 1], [], []>} : vector<8x8xf32>, vector<8x8xf32>, vector<8x8xf32> -> vector<8x8xf32>
    %58 = vector.extract_strided_slice %11 {offsets = [8, 0], sizes = [8, 32], strides = [1, 1]} : vector<32x32xf32> to vector<8x32xf32>
    %cst_28 = arith.constant dense<0.000000e+00> : vector<8x32xf32>
    %59 = tpu.matmul %57, %58, %cst_28 {dimension_numbers = #tpu.dot_dimension_numbers<[1], [0], [0], [1], [0, 0, 1, 1], [], []>} : vector<8x8xf32>, vector<8x32xf32>, vector<8x32xf32> -> vector<8x32xf32>
    %60 = arith.addf %38, %59 : vector<8x32xf32>
    %61 = vector.extract_strided_slice %8 {offsets = [0, 16], sizes = [8, 8], strides = [1, 1]} : vector<8x32xf32> to vector<8x8xf32>
    %62 = vector.extract_strided_slice %9 {offsets = [0, 16], sizes = [8, 8], strides = [1, 1]} : vector<8x32xf32> to vector<8x8xf32>
    %63 = vector.extract_strided_slice %10 {offsets = [0, 16], sizes = [8, 8], strides = [1, 1]} : vector<8x32xf32> to vector<8x8xf32>
    %cst_29 = arith.constant dense<0.000000e+00> : vector<8x8xf32>
    %64 = tpu.matmul %61, %62, %cst_29 {dimension_numbers = #tpu.dot_dimension_numbers<[1], [1], [0], [0], [0, 0, 1, 0], [], []>} : vector<8x8xf32>, vector<8x8xf32>, vector<8x8xf32> -> vector<8x8xf32>
    %cst_30 = arith.constant -1.000000e+09 : f32
    %65 = vector.shape_cast %15 : vector<1x8xi1> to vector<1x8xi1>
    %66 = vector.broadcast %65 : vector<1x8xi1> to vector<8x8xi1>
    %67 = vector.broadcast %cst_30 : f32 to vector<8x8xf32>
    %68 = arith.select %66, %67, %64 : vector<8x8xi1>, vector<8x8xf32>
    %cst_31 = arith.constant dense<0xFF800000> : vector<8xf32>
    %69 = vector.multi_reduction <maximumf>, %68, %cst_31 [1] : vector<8x8xf32> to vector<8xf32>
    %70 = vector.shape_cast %69 : vector<8xf32> to vector<8x1xf32>
    %71 = vector.broadcast %70 : vector<8x1xf32> to vector<8x8xf32>
    %72 = arith.subf %68, %71 : vector<8x8xf32>
    %73 = math.exp %72 : vector<8x8xf32>
    %cst_32 = arith.constant dense<0.000000e+00> : vector<8xf32>
    %74 = vector.multi_reduction <add>, %73, %cst_32 [1] : vector<8x8xf32> to vector<8xf32>
    %75 = vector.shape_cast %74 : vector<8xf32> to vector<8x1xf32>
    %76 = tpu.reciprocal %75 {approx = true} : vector<8x1xf32> -> vector<8x1xf32>
    %77 = vector.broadcast %76 : vector<8x1xf32> to vector<8x8xf32>
    %78 = arith.mulf %73, %77 : vector<8x8xf32>
    %cst_33 = arith.constant dense<0.000000e+00> : vector<8x8xf32>
    %79 = tpu.matmul %78, %63, %cst_33 {dimension_numbers = #tpu.dot_dimension_numbers<[1], [0], [0], [1], [0, 0, 1, 1], [], []>} : vector<8x8xf32>, vector<8x8xf32>, vector<8x8xf32> -> vector<8x8xf32>
    %80 = vector.extract_strided_slice %11 {offsets = [16, 0], sizes = [8, 32], strides = [1, 1]} : vector<32x32xf32> to vector<8x32xf32>
    %cst_34 = arith.constant dense<0.000000e+00> : vector<8x32xf32>
    %81 = tpu.matmul %79, %80, %cst_34 {dimension_numbers = #tpu.dot_dimension_numbers<[1], [0], [0], [1], [0, 0, 1, 1], [], []>} : vector<8x8xf32>, vector<8x32xf32>, vector<8x32xf32> -> vector<8x32xf32>
    %82 = arith.addf %60, %81 : vector<8x32xf32>
    %83 = vector.extract_strided_slice %8 {offsets = [0, 24], sizes = [8, 8], strides = [1, 1]} : vector<8x32xf32> to vector<8x8xf32>
    %84 = vector.extract_strided_slice %9 {offsets = [0, 24], sizes = [8, 8], strides = [1, 1]} : vector<8x32xf32> to vector<8x8xf32>
    %85 = vector.extract_strided_slice %10 {offsets = [0, 24], sizes = [8, 8], strides = [1, 1]} : vector<8x32xf32> to vector<8x8xf32>
    %cst_35 = arith.constant dense<0.000000e+00> : vector<8x8xf32>
    %86 = tpu.matmul %83, %84, %cst_35 {dimension_numbers = #tpu.dot_dimension_numbers<[1], [1], [0], [0], [0, 0, 1, 0], [], []>} : vector<8x8xf32>, vector<8x8xf32>, vector<8x8xf32> -> vector<8x8xf32>
    %cst_36 = arith.constant -1.000000e+09 : f32
    %87 = vector.shape_cast %15 : vector<1x8xi1> to vector<1x8xi1>
    %88 = vector.broadcast %87 : vector<1x8xi1> to vector<8x8xi1>
    %89 = vector.broadcast %cst_36 : f32 to vector<8x8xf32>
    %90 = arith.select %88, %89, %86 : vector<8x8xi1>, vector<8x8xf32>
    %cst_37 = arith.constant dense<0xFF800000> : vector<8xf32>
    %91 = vector.multi_reduction <maximumf>, %90, %cst_37 [1] : vector<8x8xf32> to vector<8xf32>
    %92 = vector.shape_cast %91 : vector<8xf32> to vector<8x1xf32>
    %93 = vector.broadcast %92 : vector<8x1xf32> to vector<8x8xf32>
    %94 = arith.subf %90, %93 : vector<8x8xf32>
    %95 = math.exp %94 : vector<8x8xf32>
    %cst_38 = arith.constant dense<0.000000e+00> : vector<8xf32>
    %96 = vector.multi_reduction <add>, %95, %cst_38 [1] : vector<8x8xf32> to vector<8xf32>
    %97 = vector.shape_cast %96 : vector<8xf32> to vector<8x1xf32>
    %98 = tpu.reciprocal %97 {approx = true} : vector<8x1xf32> -> vector<8x1xf32>
    %99 = vector.broadcast %98 : vector<8x1xf32> to vector<8x8xf32>
    %100 = arith.mulf %95, %99 : vector<8x8xf32>
    %cst_39 = arith.constant dense<0.000000e+00> : vector<8x8xf32>
    %101 = tpu.matmul %100, %85, %cst_39 {dimension_numbers = #tpu.dot_dimension_numbers<[1], [0], [0], [1], [0, 0, 1, 1], [], []>} : vector<8x8xf32>, vector<8x8xf32>, vector<8x8xf32> -> vector<8x8xf32>
    %102 = vector.extract_strided_slice %11 {offsets = [24, 0], sizes = [8, 32], strides = [1, 1]} : vector<32x32xf32> to vector<8x32xf32>
    %cst_40 = arith.constant dense<0.000000e+00> : vector<8x32xf32>
    %103 = tpu.matmul %101, %102, %cst_40 {dimension_numbers = #tpu.dot_dimension_numbers<[1], [0], [0], [1], [0, 0, 1, 1], [], []>} : vector<8x8xf32>, vector<8x32xf32>, vector<8x32xf32> -> vector<8x32xf32>
    %104 = arith.addf %82, %103 : vector<8x32xf32>
    %c0_41 = arith.constant 0 : index
    %c0_42 = arith.constant 0 : index
    %c0_43 = arith.constant 0 : index
    %105 = vector.load %arg10[%c0_41, %c0_42, %c0_43] : memref<1x8x32xf32, #tpu.memory_space<vmem>>, vector<1x8x32xf32>
    %106 = vector.shape_cast %105 : vector<1x8x32xf32> to vector<8x32xf32>
    %107 = vector.shape_cast %104 : vector<8x32xf32> to vector<1x8x32xf32>
    tpu.vector_store %arg10[%c0_41, %c0_42, %c0_43], %107 {strides = array<i32>} : memref<1x8x32xf32, #tpu.memory_space<vmem>>, vector<1x8x32xf32>,
    return
  }
  func.func @transform_0(%arg0: i32, %arg1: i32) -> (i32, i32, i32) {
    %c0_i32 = arith.constant 0 : i32
    %c0_i32_0 = arith.constant 0 : i32
    return %arg0, %arg1, %c0_i32 : i32, i32, i32
  }
  func.func @transform_1(%arg0: i32, %arg1: i32) -> (i32, i32, i32) {
    %c0_i32 = arith.constant 0 : i32
    %c0_i32_0 = arith.constant 0 : i32
    %c0_i32_1 = arith.constant 0 : i32
    return %arg0, %c0_i32, %c0_i32_0 : i32, i32, i32
  }
  func.func @transform_2(%arg0: i32, %arg1: i32) -> (i32, i32, i32) {
    %c0_i32 = arith.constant 0 : i32
    %c0_i32_0 = arith.constant 0 : i32
    %c0_i32_1 = arith.constant 0 : i32
    return %arg0, %c0_i32, %c0_i32_0 : i32, i32, i32
  }
  func.func @transform_3(%arg0: i32, %arg1: i32) -> (i32, i32, i32) {
    %c0_i32 = arith.constant 0 : i32
    %c0_i32_0 = arith.constant 0 : i32
    %c0_i32_1 = arith.constant 0 : i32
    return %arg0, %c0_i32, %c0_i32_0 : i32, i32, i32
  }
  func.func @transform_4(%arg0: i32, %arg1: i32) -> (i32, i32) {
    %c0_i32 = arith.constant 0 : i32
    %c0_i32_0 = arith.constant 0 : i32
    %c0_i32_1 = arith.constant 0 : i32
    return %c0_i32, %c0_i32_0 : i32, i32
  }
  func.func @transform_5(%arg0: i32, %arg1: i32) -> (i32, i32) {
    %c0_i32 = arith.constant 0 : i32
    %c0_i32_0 = arith.constant 0 : i32
    %c0_i32_1 = arith.constant 0 : i32
    return %c0_i32, %c0_i32_0 : i32, i32
  }
  func.func @transform_6(%arg0: i32, %arg1: i32) -> (i32, i32) {
    %c0_i32 = arith.constant 0 : i32
    %c0_i32_0 = arith.constant 0 : i32
    %c0_i32_1 = arith.constant 0 : i32
    return %c0_i32, %c0_i32_0 : i32, i32
  }
  func.func @transform_7(%arg0: i32, %arg1: i32) -> (i32, i32) {
    %c0_i32 = arith.constant 0 : i32
    %c0_i32_0 = arith.constant 0 : i32
    %c0_i32_1 = arith.constant 0 : i32
    return %c0_i32, %c0_i32_0 : i32, i32
  }
  func.func @transform_8(%arg0: i32, %arg1: i32) -> (i32, i32, i32) {
    %c0_i32 = arith.constant 0 : i32
    %c0_i32_0 = arith.constant 0 : i32
    return %arg0, %arg1, %c0_i32 : i32, i32, i32
  }
}

module attributes {stable_mosaic.version = 11 : i64} {
  func.func @_mha_kernel(%arg0: i32, %arg1: i32, %arg2: memref<1x8x32xf32, #tpu.memory_space<vmem>>, %arg3: memref<1x8x32xf32, #tpu.memory_space<vmem>>, %arg4: memref<1x8x32xf32, #tpu.memory_space<vmem>>, %arg5: memref<1x1x8xi32, #tpu.memory_space<vmem>>, %arg6: memref<32x32xf32, #tpu.memory_space<vmem>>, %arg7: memref<32x32xf32, #tpu.memory_space<vmem>>, %arg8: memref<32x32xf32, #tpu.memory_space<vmem>>, %arg9: memref<32x32xf32, #tpu.memory_space<vmem>>, %arg10: memref<1x8x32xf32, #tpu.memory_space<vmem>>, %arg11: memref<8x32xf32, #tpu.memory_space<vmem>>, %arg12: memref<8x32xf32, #tpu.memory_space<vmem>>) attributes {dimension_semantics = [#tpu.dimension_semantics<parallel>, #tpu.dimension_semantics<arbitrary>], iteration_bounds = array<i64: 2, 1>, scalar_prefetch = 0 : i64, scratch_operands = 2 : i64, tpu.core_type = #tpu.core_type<tc>, window_params = [{transform_indices = @transform_0, window_bounds = array<i64: 1, 8, 32>}, {transform_indices = @transform_1, window_bounds = array<i64: 1, 8, 32>}, {transform_indices = @transform_2, window_bounds = array<i64: 1, 8, 32>}, {transform_indices = @transform_3, window_bounds = array<i64: 1, 1, 8>}, {pipeline_mode = #tpu.pipeline_mode<synchronous>, transform_indices = @transform_4, window_bounds = array<i64: 32, 32>}, {pipeline_mode = #tpu.pipeline_mode<synchronous>, transform_indices = @transform_5, window_bounds = array<i64: 32, 32>}, {pipeline_mode = #tpu.pipeline_mode<synchronous>, transform_indices = @transform_6, window_bounds = array<i64: 32, 32>}, {pipeline_mode = #tpu.pipeline_mode<synchronous>, transform_indices = @transform_7, window_bounds = array<i64: 32, 32>}, {transform_indices = @transform_8, window_bounds = array<i64: 1, 8, 32>}]} {
    %c0_i32 = arith.constant 0 : i32
    %0 = arith.cmpi eq, %arg1, %c0_i32 : i32
    %1 = arith.extui %0 : i1 to i32
    %c0_i32_0 = arith.constant 0 : i32
    %2 = arith.cmpi ne, %1, %c0_i32_0 : i32
    scf.if %2 {
      %c0_44 = arith.constant 0 : index
      %c0_45 = arith.constant 0 : index
      %c0_46 = arith.constant 0 : index
      %108 = vector.load %arg3[%c0_44, %c0_45, %c0_46] : memref<1x8x32xf32, #tpu.memory_space<vmem>>, vector<1x8x32xf32>
      %109 = vector.shape_cast %108 : vector<1x8x32xf32> to vector<8x32xf32>
      %c0_47 = arith.constant 0 : index
      %c0_48 = arith.constant 0 : index
      %110 = vector.load %arg7[%c0_47, %c0_48] : memref<32x32xf32, #tpu.memory_space<vmem>>, vector<32x32xf32>
      %cst_49 = arith.constant dense<0.000000e+00> : vector<8x32xf32>
      %111 = tpu.matmul %109, %110, %cst_49 {dimension_numbers = #tpu.dot_dimension_numbers<[1], [0], [0], [1], [0, 0, 1, 1], [], []>} : vector<8x32xf32>, vector<32x32xf32>, vector<8x32xf32> -> vector<8x32xf32>
      %c0_50 = arith.constant 0 : index
      %c0_51 = arith.constant 0 : index
      %112 = vector.load %arg11[%c0_50, %c0_51] : memref<8x32xf32, #tpu.memory_space<vmem>>, vector<8x32xf32>
      tpu.vector_store %arg11[%c0_50, %c0_51], %111 {strides = array<i32>} : memref<8x32xf32, #tpu.memory_space<vmem>>, vector<8x32xf32>,
      %c0_52 = arith.constant 0 : index
      %c0_53 = arith.constant 0 : index
      %c0_54 = arith.constant 0 : index
      %113 = vector.load %arg4[%c0_52, %c0_53, %c0_54] : memref<1x8x32xf32, #tpu.memory_space<vmem>>, vector<1x8x32xf32>
      %114 = vector.shape_cast %113 : vector<1x8x32xf32> to vector<8x32xf32>
      %c0_55 = arith.constant 0 : index
      %c0_56 = arith.constant 0 : index
      %115 = vector.load %arg8[%c0_55, %c0_56] : memref<32x32xf32, #tpu.memory_space<vmem>>, vector<32x32xf32>
      %cst_57 = arith.constant dense<0.000000e+00> : vector<8x32xf32>
      %116 = tpu.matmul %114, %115, %cst_57 {dimension_numbers = #tpu.dot_dimension_numbers<[1], [0], [0], [1], [0, 0, 1, 1], [], []>} : vector<8x32xf32>, vector<32x32xf32>, vector<8x32xf32> -> vector<8x32xf32>
      %c0_58 = arith.constant 0 : index
      %c0_59 = arith.constant 0 : index
      %117 = vector.load %arg12[%c0_58, %c0_59] : memref<8x32xf32, #tpu.memory_space<vmem>>, vector<8x32xf32>
      tpu.vector_store %arg12[%c0_58, %c0_59], %116 {strides = array<i32>} : memref<8x32xf32, #tpu.memory_space<vmem>>, vector<8x32xf32>,
    } else {
    }
    %c0 = arith.constant 0 : index
    %c0_1 = arith.constant 0 : index
    %c0_2 = arith.constant 0 : index
    %3 = vector.load %arg2[%c0, %c0_1, %c0_2] : memref<1x8x32xf32, #tpu.memory_space<vmem>>, vector<1x8x32xf32>
    %4 = vector.shape_cast %3 : vector<1x8x32xf32> to vector<8x32xf32>
    %c0_3 = arith.constant 0 : index
    %c0_4 = arith.constant 0 : index
    %5 = vector.load %arg6[%c0_3, %c0_4] : memref<32x32xf32, #tpu.memory_space<vmem>>, vector<32x32xf32>
    %cst = arith.constant dense<0.000000e+00> : vector<8x32xf32>
    %6 = tpu.matmul %4, %5, %cst {dimension_numbers = #tpu.dot_dimension_numbers<[1], [0], [0], [1], [0, 0, 1, 1], [], []>} : vector<8x32xf32>, vector<32x32xf32>, vector<8x32xf32> -> vector<8x32xf32>
    %cst_5 = arith.constant 0.353553385 : f32
    %7 = vector.broadcast %cst_5 : f32 to vector<8x32xf32>
    %8 = arith.mulf %6, %7 : vector<8x32xf32>
    %c0_6 = arith.constant 0 : index
    %c0_7 = arith.constant 0 : index
    %9 = vector.load %arg11[%c0_6, %c0_7] : memref<8x32xf32, #tpu.memory_space<vmem>>, vector<8x32xf32>
    %c0_8 = arith.constant 0 : index
    %c0_9 = arith.constant 0 : index
    %10 = vector.load %arg12[%c0_8, %c0_9] : memref<8x32xf32, #tpu.memory_space<vmem>>, vector<8x32xf32>
    %c0_10 = arith.constant 0 : index
    %c0_11 = arith.constant 0 : index
    %11 = vector.load %arg9[%c0_10, %c0_11] : memref<32x32xf32, #tpu.memory_space<vmem>>, vector<32x32xf32>
    %c0_12 = arith.constant 0 : index
    %c0_13 = arith.constant 0 : index
    %c0_14 = arith.constant 0 : index
    %12 = vector.load %arg5[%c0_12, %c0_13, %c0_14] : memref<1x1x8xi32, #tpu.memory_space<vmem>>, vector<1x1x8xi32>
    %13 = vector.shape_cast %12 : vector<1x1x8xi32> to vector<1x8xi32>
    %c0_i32_15 = arith.constant 0 : i32
    %14 = vector.broadcast %c0_i32_15 : i32 to vector<1x8xi32>
    %15 = arith.cmpi eq, %13, %14 : vector<1x8xi32>
    %cst_16 = arith.constant 0.000000e+00 : f32
    %16 = vector.broadcast %cst_16 : f32 to vector<8x32xf32>
    %17 = vector.extract_strided_slice %8 {offsets = [0, 0], sizes = [8, 8], strides = [1, 1]} : vector<8x32xf32> to vector<8x8xf32>
    %18 = vector.extract_strided_slice %9 {offsets = [0, 0], sizes = [8, 8], strides = [1, 1]} : vector<8x32xf32> to vector<8x8xf32>
    %19 = vector.extract_strided_slice %10 {offsets = [0, 0], sizes = [8, 8], strides = [1, 1]} : vector<8x32xf32> to vector<8x8xf32>
    %cst_17 = arith.constant dense<0.000000e+00> : vector<8x8xf32>
    %20 = tpu.matmul %17, %18, %cst_17 {dimension_numbers = #tpu.dot_dimension_numbers<[1], [1], [0], [0], [0, 0, 1, 0], [], []>} : vector<8x8xf32>, vector<8x8xf32>, vector<8x8xf32> -> vector<8x8xf32>
    %cst_18 = arith.constant -1.000000e+09 : f32
    %21 = vector.shape_cast %15 : vector<1x8xi1> to vector<1x8xi1>
    %22 = vector.broadcast %21 : vector<1x8xi1> to vector<8x8xi1>
    %23 = vector.broadcast %cst_18 : f32 to vector<8x8xf32>
    %24 = arith.select %22, %23, %20 : vector<8x8xi1>, vector<8x8xf32>
    %cst_19 = arith.constant dense<0xFF800000> : vector<8xf32>
    %25 = vector.multi_reduction <maximumf>, %24, %cst_19 [1] : vector<8x8xf32> to vector<8xf32>
    %26 = vector.shape_cast %25 : vector<8xf32> to vector<8x1xf32>
    %27 = vector.broadcast %26 : vector<8x1xf32> to vector<8x8xf32>
    %28 = arith.subf %24, %27 : vector<8x8xf32>
    %29 = math.exp %28 : vector<8x8xf32>
    %cst_20 = arith.constant dense<0.000000e+00> : vector<8xf32>
    %30 = vector.multi_reduction <add>, %29, %cst_20 [1] : vector<8x8xf32> to vector<8xf32>
    %31 = vector.shape_cast %30 : vector<8xf32> to vector<8x1xf32>
    %32 = tpu.reciprocal %31 {approx = true} : vector<8x1xf32> -> vector<8x1xf32>
    %33 = vector.broadcast %32 : vector<8x1xf32> to vector<8x8xf32>
    %34 = arith.mulf %29, %33 : vector<8x8xf32>
    %cst_21 = arith.constant dense<0.000000e+00> : vector<8x8xf32>
    %35 = tpu.matmul %34, %19, %cst_21 {dimension_numbers = #tpu.dot_dimension_numbers<[1], [0], [0], [1], [0, 0, 1, 1], [], []>} : vector<8x8xf32>, vector<8x8xf32>, vector<8x8xf32> -> vector<8x8xf32>
    %36 = vector.extract_strided_slice %11 {offsets = [0, 0], sizes = [8, 32], strides = [1, 1]} : vector<32x32xf32> to vector<8x32xf32>
    %cst_22 = arith.constant dense<0.000000e+00> : vector<8x32xf32>
    %37 = tpu.matmul %35, %36, %cst_22 {dimension_numbers = #tpu.dot_dimension_numbers<[1], [0], [0], [1], [0, 0, 1, 1], [], []>} : vector<8x8xf32>, vector<8x32xf32>, vector<8x32xf32> -> vector<8x32xf32>
    %38 = arith.addf %16, %37 : vector<8x32xf32>
    %39 = vector.extract_strided_slice %8 {offsets = [0, 8], sizes = [8, 8], strides = [1, 1]} : vector<8x32xf32> to vector<8x8xf32>
    %40 = vector.extract_strided_slice %9 {offsets = [0, 8], sizes = [8, 8], strides = [1, 1]} : vector<8x32xf32> to vector<8x8xf32>
    %41 = vector.extract_strided_slice %10 {offsets = [0, 8], sizes = [8, 8], strides = [1, 1]} : vector<8x32xf32> to vector<8x8xf32>
    %cst_23 = arith.constant dense<0.000000e+00> : vector<8x8xf32>
    %42 = tpu.matmul %39, %40, %cst_23 {dimension_numbers = #tpu.dot_dimension_numbers<[1], [1], [0], [0], [0, 0, 1, 0], [], []>} : vector<8x8xf32>, vector<8x8xf32>, vector<8x8xf32> -> vector<8x8xf32>
    %cst_24 = arith.constant -1.000000e+09 : f32
    %43 = vector.shape_cast %15 : vector<1x8xi1> to vector<1x8xi1>
    %44 = vector.broadcast %43 : vector<1x8xi1> to vector<8x8xi1>
    %45 = vector.broadcast %cst_24 : f32 to vector<8x8xf32>
    %46 = arith.select %44, %45, %42 : vector<8x8xi1>, vector<8x8xf32>
    %cst_25 = arith.constant dense<0xFF800000> : vector<8xf32>
    %47 = vector.multi_reduction <maximumf>, %46, %cst_25 [1] : vector<8x8xf32> to vector<8xf32>
    %48 = vector.shape_cast %47 : vector<8xf32> to vector<8x1xf32>
    %49 = vector.broadcast %48 : vector<8x1xf32> to vector<8x8xf32>
    %50 = arith.subf %46, %49 : vector<8x8xf32>
    %51 = math.exp %50 : vector<8x8xf32>
    %cst_26 = arith.constant dense<0.000000e+00> : vector<8xf32>
    %52 = vector.multi_reduction <add>, %51, %cst_26 [1] : vector<8x8xf32> to vector<8xf32>
    %53 = vector.shape_cast %52 : vector<8xf32> to vector<8x1xf32>
    %54 = tpu.reciprocal %53 {approx = true} : vector<8x1xf32> -> vector<8x1xf32>
    %55 = vector.broadcast %54 : vector<8x1xf32> to vector<8x8xf32>
    %56 = arith.mulf %51, %55 : vector<8x8xf32>
    %cst_27 = arith.constant dense<0.000000e+00> : vector<8x8xf32>
    %57 = tpu.matmul %56, %41, %cst_27 {dimension_numbers = #tpu.dot_dimension_numbers<[1], [0], [0], [1], [0, 0, 1, 1], [], []>} : vector<8x8xf32>, vector<8x8xf32>, vector<8x8xf32> -> vector<8x8xf32>
    %58 = vector.extract_strided_slice %11 {offsets = [8, 0], sizes = [8, 32], strides = [1, 1]} : vector<32x32xf32> to vector<8x32xf32>
    %cst_28 = arith.constant dense<0.000000e+00> : vector<8x32xf32>
    %59 = tpu.matmul %57, %58, %cst_28 {dimension_numbers = #tpu.dot_dimension_numbers<[1], [0], [0], [1], [0, 0, 1, 1], [], []>} : vector<8x8xf32>, vector<8x32xf32>, vector<8x32xf32> -> vector<8x32xf32>
    %60 = arith.addf %38, %59 : vector<8x32xf32>
    %61 = vector.extract_strided_slice %8 {offsets = [0, 16], sizes = [8, 8], strides = [1, 1]} : vector<8x32xf32> to vector<8x8xf32>
    %62 = vector.extract_strided_slice %9 {offsets = [0, 16], sizes = [8, 8], strides = [1, 1]} : vector<8x32xf32> to vector<8x8xf32>
    %63 = vector.extract_strided_slice %10 {offsets = [0, 16], sizes = [8, 8], strides = [1, 1]} : vector<8x32xf32> to vector<8x8xf32>
    %cst_29 = arith.constant dense<0.000000e+00> : vector<8x8xf32>
    %64 = tpu.matmul %61, %62, %cst_29 {dimension_numbers = #tpu.dot_dimension_numbers<[1], [1], [0], [0], [0, 0, 1, 0], [], []>} : vector<8x8xf32>, vector<8x8xf32>, vector<8x8xf32> -> vector<8x8xf32>
    %cst_30 = arith.constant -1.000000e+09 : f32
    %65 = vector.shape_cast %15 : vector<1x8xi1> to vector<1x8xi1>
    %66 = vector.broadcast %65 : vector<1x8xi1> to vector<8x8xi1>
    %67 = vector.broadcast %cst_30 : f32 to vector<8x8xf32>
    %68 = arith.select %66, %67, %64 : vector<8x8xi1>, vector<8x8xf32>
    %cst_31 = arith.constant dense<0xFF800000> : vector<8xf32>
    %69 = vector.multi_reduction <maximumf>, %68, %cst_31 [1] : vector<8x8xf32> to vector<8xf32>
    %70 = vector.shape_cast %69 : vector<8xf32> to vector<8x1xf32>
    %71 = vector.broadcast %70 : vector<8x1xf32> to vector<8x8xf32>
    %72 = arith.subf %68, %71 : vector<8x8xf32>
    %73 = math.exp %72 : vector<8x8xf32>
    %cst_32 = arith.constant dense<0.000000e+00> : vector<8xf32>
    %74 = vector.multi_reduction <add>, %73, %cst_32 [1] : vector<8x8xf32> to vector<8xf32>
    %75 = vector.shape_cast %74 : vector<8xf32> to vector<8x1xf32>
    %76 = tpu.reciprocal %75 {approx = true} : vector<8x1xf32> -> vector<8x1xf32>
    %77 = vector.broadcast %76 : vector<8x1xf32> to vector<8x8xf32>
    %78 = arith.mulf %73, %77 : vector<8x8xf32>
    %cst_33 = arith.constant dense<0.000000e+00> : vector<8x8xf32>
    %79 = tpu.matmul %78, %63, %cst_33 {dimension_numbers = #tpu.dot_dimension_numbers<[1], [0], [0], [1], [0, 0, 1, 1], [], []>} : vector<8x8xf32>, vector<8x8xf32>, vector<8x8xf32> -> vector<8x8xf32>
    %80 = vector.extract_strided_slice %11 {offsets = [16, 0], sizes = [8, 32], strides = [1, 1]} : vector<32x32xf32> to vector<8x32xf32>
    %cst_34 = arith.constant dense<0.000000e+00> : vector<8x32xf32>
    %81 = tpu.matmul %79, %80, %cst_34 {dimension_numbers = #tpu.dot_dimension_numbers<[1], [0], [0], [1], [0, 0, 1, 1], [], []>} : vector<8x8xf32>, vector<8x32xf32>, vector<8x32xf32> -> vector<8x32xf32>
    %82 = arith.addf %60, %81 : vector<8x32xf32>
    %83 = vector.extract_strided_slice %8 {offsets = [0, 24], sizes = [8, 8], strides = [1, 1]} : vector<8x32xf32> to vector<8x8xf32>
    %84 = vector.extract_strided_slice %9 {offsets = [0, 24], sizes = [8, 8], strides = [1, 1]} : vector<8x32xf32> to vector<8x8xf32>
    %85 = vector.extract_strided_slice %10 {offsets = [0, 24], sizes = [8, 8], strides = [1, 1]} : vector<8x32xf32> to vector<8x8xf32>
    %cst_35 = arith.constant dense<0.000000e+00> : vector<8x8xf32>
    %86 = tpu.matmul %83, %84, %cst_35 {dimension_numbers = #tpu.dot_dimension_numbers<[1], [1], [0], [0], [0, 0, 1, 0], [], []>} : vector<8x8xf32>, vector<8x8xf32>, vector<8x8xf32> -> vector<8x8xf32>
    %cst_36 = arith.constant -1.000000e+09 : f32
    %87 = vector.shape_cast %15 : vector<1x8xi1> to vector<1x8xi1>
    %88 = vector.broadcast %87 : vector<1x8xi1> to vector<8x8xi1>
    %89 = vector.broadcast %cst_36 : f32 to vector<8x8xf32>
    %90 = arith.select %88, %89, %86 : vector<8x8xi1>, vector<8x8xf32>
    %cst_37 = arith.constant dense<0xFF800000> : vector<8xf32>
    %91 = vector.multi_reduction <maximumf>, %90, %cst_37 [1] : vector<8x8xf32> to vector<8xf32>
    %92 = vector.shape_cast %91 : vector<8xf32> to vector<8x1xf32>
    %93 = vector.broadcast %92 : vector<8x1xf32> to vector<8x8xf32>
    %94 = arith.subf %90, %93 : vector<8x8xf32>
    %95 = math.exp %94 : vector<8x8xf32>
    %cst_38 = arith.constant dense<0.000000e+00> : vector<8xf32>
    %96 = vector.multi_reduction <add>, %95, %cst_38 [1] : vector<8x8xf32> to vector<8xf32>
    %97 = vector.shape_cast %96 : vector<8xf32> to vector<8x1xf32>
    %98 = tpu.reciprocal %97 {approx = true} : vector<8x1xf32> -> vector<8x1xf32>
    %99 = vector.broadcast %98 : vector<8x1xf32> to vector<8x8xf32>
    %100 = arith.mulf %95, %99 : vector<8x8xf32>
    %cst_39 = arith.constant dense<0.000000e+00> : vector<8x8xf32>
    %101 = tpu.matmul %100, %85, %cst_39 {dimension_numbers = #tpu.dot_dimension_numbers<[1], [0], [0], [1], [0, 0, 1, 1], [], []>} : vector<8x8xf32>, vector<8x8xf32>, vector<8x8xf32> -> vector<8x8xf32>
    %102 = vector.extract_strided_slice %11 {offsets = [24, 0], sizes = [8, 32], strides = [1, 1]} : vector<32x32xf32> to vector<8x32xf32>
    %cst_40 = arith.constant dense<0.000000e+00> : vector<8x32xf32>
    %103 = tpu.matmul %101, %102, %cst_40 {dimension_numbers = #tpu.dot_dimension_numbers<[1], [0], [0], [1], [0, 0, 1, 1], [], []>} : vector<8x8xf32>, vector<8x32xf32>, vector<8x32xf32> -> vector<8x32xf32>
    %104 = arith.addf %82, %103 : vector<8x32xf32>
    %c0_41 = arith.constant 0 : index
    %c0_42 = arith.constant 0 : index
    %c0_43 = arith.constant 0 : index
    %105 = vector.load %arg10[%c0_41, %c0_42, %c0_43] : memref<1x8x32xf32, #tpu.memory_space<vmem>>, vector<1x8x32xf32>
    %106 = vector.shape_cast %105 : vector<1x8x32xf32> to vector<8x32xf32>
    %107 = vector.shape_cast %104 : vector<8x32xf32> to vector<1x8x32xf32>
    tpu.vector_store %arg10[%c0_41, %c0_42, %c0_43], %107 {strides = array<i32>} : memref<1x8x32xf32, #tpu.memory_space<vmem>>, vector<1x8x32xf32>,
    return
  }
  func.func @transform_0(%arg0: i32, %arg1: i32) -> (i32, i32, i32) {
    %c0_i32 = arith.constant 0 : i32
    %c0_i32_0 = arith.constant 0 : i32
    return %arg0, %arg1, %c0_i32 : i32, i32, i32
  }
  func.func @transform_1(%arg0: i32, %arg1: i32) -> (i32, i32, i32) {
    %c0_i32 = arith.constant 0 : i32
    %c0_i32_0 = arith.constant 0 : i32
    %c0_i32_1 = arith.constant 0 : i32
    return %arg0, %c0_i32, %c0_i32_0 : i32, i32, i32
  }
  func.func @transform_2(%arg0: i32, %arg1: i32) -> (i32, i32, i32) {
    %c0_i32 = arith.constant 0 : i32
    %c0_i32_0 = arith.constant 0 : i32
    %c0_i32_1 = arith.constant 0 : i32
    return %arg0, %c0_i32, %c0_i32_0 : i32, i32, i32
  }
  func.func @transform_3(%arg0: i32, %arg1: i32) -> (i32, i32, i32) {
    %c0_i32 = arith.constant 0 : i32
    %c0_i32_0 = arith.constant 0 : i32
    %c0_i32_1 = arith.constant 0 : i32
    return %arg0, %c0_i32, %c0_i32_0 : i32, i32, i32
  }
  func.func @transform_4(%arg0: i32, %arg1: i32) -> (i32, i32) {
    %c0_i32 = arith.constant 0 : i32
    %c0_i32_0 = arith.constant 0 : i32
    %c0_i32_1 = arith.constant 0 : i32
    return %c0_i32, %c0_i32_0 : i32, i32
  }
  func.func @transform_5(%arg0: i32, %arg1: i32) -> (i32, i32) {
    %c0_i32 = arith.constant 0 : i32
    %c0_i32_0 = arith.constant 0 : i32
    %c0_i32_1 = arith.constant 0 : i32
    return %c0_i32, %c0_i32_0 : i32, i32
  }
  func.func @transform_6(%arg0: i32, %arg1: i32) -> (i32, i32) {
    %c0_i32 = arith.constant 0 : i32
    %c0_i32_0 = arith.constant 0 : i32
    %c0_i32_1 = arith.constant 0 : i32
    return %c0_i32, %c0_i32_0 : i32, i32
  }
  func.func @transform_7(%arg0: i32, %arg1: i32) -> (i32, i32) {
    %c0_i32 = arith.constant 0 : i32
    %c0_i32_0 = arith.constant 0 : i32
    %c0_i32_1 = arith.constant 0 : i32
    return %c0_i32, %c0_i32_0 : i32, i32
  }
  func.func @transform_8(%arg0: i32, %arg1: i32) -> (i32, i32, i32) {
    %c0_i32 = arith.constant 0 : i32
    %c0_i32_0 = arith.constant 0 : i32
    return %arg0, %arg1, %c0_i32 : i32, i32, i32
  }
}

</mosaic_0001>

<bundles_post_ra>
// kernel: tpu_custom_call.1
= control target key start
LH: loop header
LB: loop body
LE: loop exit
PB: predicated region body
PF: predicated region fallthrough
CT: control target
= control target key end

     0   :  { %s2929_s0 = inlined_call_operand.hbm [shape: f32[2,8,32], index: 0, kind: input, shape index: {}]   ;;  %s2930_s1 = inlined_call_operand.hbm [shape: f32[2,8,32], index: 1, kind: input, shape index: {}]   ;;  %s2931_s2 = inlined_call_operand.hbm [shape: f32[2,8,32], index: 2, kind: input, shape index: {}]   ;;  %s2932_s3 = inlined_call_operand.vmem [shape: s32[2,1,8], index: 3, kind: input, shape index: {}]   ;;  %s2933_s4 = inlined_call_operand.hbm [shape: f32[32,32], index: 4, kind: input, shape index: {}]   ;;  %s2934_s5 = inlined_call_operand.hbm [shape: f32[32,32], index: 5, kind: input, shape index: {}]   ;;  %s2935_s6 = inlined_call_operand.hbm [shape: f32[32,32], index: 6, kind: input, shape index: {}]   ;;  %s2936_s7 = inlined_call_operand.hbm [shape: f32[32,32], index: 7, kind: input, shape index: {}]   ;;  %s2937_s8 = inlined_call_operand.hbm [shape: f32[2,8,32], index: 8, kind: output, shape index: {}]  }
   0x1   :  { %2953 = sst [smem:[#allocation28_spill]] %s2930_s1 }
   0x2   :  { %2954 = sst [smem:[#allocation29_spill]] %s2933_s4 }
   0x3   :  { %2955 = sst [smem:[#allocation30_spill]] %s2934_s5 }
   0x4   :  { %2956 = sst [smem:[#allocation31_spill]] %s2935_s6 }
   0x5   :  { %13 = vsyncpa [#allocation5], 0 }
   0x6   :  { %15 = vsyncpa [#allocation5 + $0x1], 0 }
   0x7   :  { %16 = vsyncpa [#allocation8], 0 }
   0x8   :  { %18 = vsyncpa [#allocation8 + $0x1], 0 }
   0x9   :  { %19 = vsyncpa [#allocation11], 0 }
   0xa   :  { %20 = vsyncpa [#allocation14], 0 }
   0xb   :  { %21 = vsyncpa [#allocation6], 0 }
   0xc   :  { %23 = vsyncpa [#allocation6 + $0x1], 0  ;;  %s2537_s27 = smov 0   ;;  %s2539_s28 = smov 0  }
   0xd   :  { %s2541_s29 = smov 0   ;;  %s2543_s30 = smov 0  }
   0xe   :  { %s2545_s9 = smov 0   ;;  %s2547_s10 = smov 0  }
   0xf LB: > { %2957 = sst [smem:[#allocation22_spill]] %s2454_s27  ;;  %s2568_s11 = sadd.s32 4294967295, %s2474_s10   ;;  %s2474_s10 = sphi %s2547_s10, %s29_s10   ;;  %s2470_s9 = sphi %s2545_s9, %s2993_s9   ;;  %s2466_s30 = sphi %s2543_s30, %s2992_s30   ;;  %s2462_s29 = sphi %s2541_s29, %s2996_s29   ;;  %s2458_s28 = sphi %s2539_s28, %s2995_s28   ;;  %s2454_s27 = sphi %s2537_s27, %s2994_s27  }
  0x10   : > { %2958 = sst [smem:[#allocation23_spill]] %s2470_s9  ;;  %p1881_p0 = scmp.ge.s32.totalorder %s2474_s10, 1 }
  0x11   : > { %2959 = sst [smem:[#allocation24_spill]] %s2474_s10  ;;  %p2947_p1 = scmp.eq.s32.totalorder %s2568_s11, 0 }
  0x12   : > { %p264_p2 = scmp.lt.s32.totalorder %s2474_s10, 3  ;;  %s2476_s13 = smov [#allocation10]  }
  0x13   : > { %s276_s14 = sshll.u32 %s2476_s13, 4  ;;  %s2477_s16 = smov [#allocation13]   ;;  %s277_s14 = int_to_ptr.vmem [resolvable:$true] %s276_s14 }
  0x14   : > { %p2573_p3 = pnand %p1881_p0, %p264_p2  ;;  %s302_s17 = sshll.u32 %s2477_s16, 4  ;;  %s303_s17 = int_to_ptr.vmem [resolvable:$true] %s302_s17 }
  0x15   : > { %s2205_s18 = scalar_lea.vmem %s277_s14, 512  ;;  %p2213_p11 = scmp.lt.s32.totalorder %s277_s14, %s277_s14 }
  0x16   : > { %p2081_p4 = pneg %p2573_p3  ;;  %p2206_p8 = scmp.ne.s32.totalorder %s277_s14, %s2205_s18 }
  0x17   : > { %p2214_p12 = scmp.lt.s32.totalorder %s2205_s18, %s2205_s18 }
  0x18   : > { %p2582_p6 = pnand %p2081_p4, %p2947_p1 }
  0x19   : > { %p2215_p13 = por %p2214_p12, %p2213_p11 }
  0x1a   : > { %p2948_p7 = pneg %p2582_p6 }
  0x1c   : > { %p2208_p9 = pnand %p2206_p8, %p2948_p7 }
  0x1e   : > { %p2209_p10 = pneg %p2208_p9 }
  0x20   : > { %p2216_p0 = pnand %p2215_p13, %p2209_p10 }
  0x22   : > { %2219 = shalt.err (!%p2216_p0)
}
  0x23   : > { %s2938_s19 = smov 128   ;;  %s2940_s20 = smov 8  }
  0x24   : > { %s2962_s4 = sld [smem:[#allocation29_spill]]  ;;  %s2231_s23 = scalar_lea.vmem %s303_s17, 512 }
  0x25   : > { %p2232_p2 = scmp.ne.s32.totalorder %s303_s17, %s2231_s23  ;;  %p2239_p9 = scmp.lt.s32.totalorder %s303_s17, %s303_s17 }
  0x26   : > { %p2240_p10 = scmp.lt.s32.totalorder %s2231_s23, %s2231_s23 }
  0x27   : > { %p2234_p4 = pnand %p2232_p2, %p2948_p7 }
  0x28   : > { %p2241_p11 = por %p2240_p10, %p2239_p9 }
  0x29   : > { %p2235_p8 = pneg %p2234_p4 }
  0x2a   : > { %2084 = dma.hbm_to_vmem [thread:$0]  (!%p2582_p6), %s2962_s4, 512, %s277_s14, [#allocation11], %s2938_s19, %s2938_s19, %s2940_s20  }
  0x2b   : > { %p2242_p12 = pnand %p2241_p11, %p2235_p8 }
  0x2d   : > { %2245 = shalt.err (!%p2242_p12)
}
  0x2e   : > { %s2963_s6 = sld [smem:[#allocation31_spill]]  ;;  %s1880_s26 = sadd.s32 4294967294, %s2474_s10  }
  0x2f   : > { %s41_s13 = sadd.s32 1, %s2470_s9  ;;  %s50_s14 = sadd.s32 1, %s2462_s29 }
  0x30   : > { %p43_p13 = scmp.ge.s32.totalorder %s41_s13, 2  ;;  %p57_p0 = scmp.ne.s32.totalorder %s2462_s29, %s2458_s28 }
  0x31   : > { %p58_p2 = scmp.eq.s32.totalorder %s2474_s10, 0  ;;  %p63_p8 = scmp.ne.s32.totalorder %s2458_s28, %s2454_s27 }
  0x32   : > { %s2998_s13 = smov (%p43_p13, %s41_s13), 0  ;;  %p251_p9 = scmp.eq.s32.totalorder %s2568_s11, 1 }
  0x33   : > { %2964 = sst [smem:[#allocation25_spill]] %s2998_s13  ;;  %p2618_p4 = por %p58_p2, %p57_p0 }
  0x34   : > { %2090 = dma.hbm_to_vmem [thread:$0]  (!%p2582_p6), %s2963_s6, 512, %s303_s17, [#allocation14], %s2938_s19, %s2938_s19, %s2940_s20  }
  0x35   : > { %s45_s17 = ssub.s32 %s2470_s9, %s2998_s13  ;;  %p2629_p11 = por %p2947_p1, %p63_p8 }
  0x36   : > { %p48_p10 = scmp.eq.s32.totalorder %s45_s17, 0  ;;  %p2633_p12 = por %p251_p9, %p57_p0 }
  0x37   : > { %p257_p13 = scmp.eq.s32.totalorder %s1880_s26, 1  ;;  %p2112_p5 = scmp.lt.s32.totalorder %s2474_s10, 2 }
  0x38   : > { %s2967_s21 = scalar_select %p2633_p12, 1, 0 }
  0x39   : > { %s2638_s22 = scalar_select %p48_p10, %s2462_s29, %s50_s14  }
  0x3a   : > { %p2640_p2 = por %p257_p13, %p63_p8  ;;  %s2944_s24 = sand.u32 1, %s2462_s29  }
  0x3b   : > { %2968 = sst [smem:[#allocation26_spill]] %s2638_s22  ;;  %s2647_s25 = sshll.u32 %s2470_s9, 7 }
  0x3c   : > { %s2969_s23 = scalar_select %p2640_p2, 1, 0 }
  0x3d   : > { %s2651_s17 = sshll.u32 %s2944_s24, 3  ;;  %p2655_p0 = pnand %p2112_p5, %p2618_p4 }
  0x3e   : > { %2970 = sst [smem:[#allocation27_spill]] %s2969_s23  ;;  %s348_s26 = sand.u32 1, %s2474_s10  }
  0x3f   : > { %s2972_s1 = sld [smem:[#allocation28_spill]]  ;;  %s352_s6 = scalar_lea.vmem [#allocation7], %s2651_s17 }
  0x40   : > { %s359_s13 = sshll.u32 %s352_s6, 4  ;;  %s2665_s9 = scalar_lea.sflag [#allocation8], %s348_s26  ;;  %s360_s13 = int_to_ptr.vmem [resolvable:$true] %s359_s13 }
  0x41   : > { %p2949_p8 = pneg %p2655_p0  ;;  %s2259_s16 = scalar_lea.vmem %s360_s13, 128 }
  0x42   : > { %p2260_p9 = scmp.ne.s32.totalorder %s360_s13, %s2259_s16  ;;  %s2480_s24 = smov [#allocation7]  }
  0x43   : > { %s2264_s22 = sshll.u32 %s2480_s24, 4  ;;  %s2265_s22 = int_to_ptr.vmem [resolvable:$false] %s2264_s22 }
  0x44   : > { %p2262_p5 = pnand %p2260_p9, %p2949_p8  ;;  %s2266_s10 = scalar_lea.vmem %s2265_s22, 256 }
  0x45   : > { %s357_s4 = scalar_lea.hbm %s2972_s1, %s2647_s25  ;;  %p2267_p10 = scmp.lt.s32.totalorder %s360_s13, %s2265_s22 }
  0x46   : > { %p2263_p4 = pneg %p2262_p5  ;;  %p2268_p13 = scmp.lt.s32.totalorder %s2266_s10, %s2259_s16 }
  0x48   : > { %p2269_p1 = por %p2268_p13, %p2267_p10 }
  0x4a   : > { %p2270_p7 = pnand %p2269_p1, %p2263_p4 }
  0x4c   : > { %2273 = shalt.err (!%p2270_p7)
}
  0x4d   : > { %2100 = dma.hbm_to_vmem [thread:$0]  (!%p2655_p0), %s357_s4, 128, %s360_s13, %s2665_s9  }
  0x4e   : > { %s2481_s6 = smov [#allocation12]   ;;  %s2482_s26 = smov [#allocation15]  }
  0x4f   : > { %s289_s20 = sshll.u32 %s2481_s6, 4  ;;  %s315_s14 = sshll.u32 %s2482_s26, 4  ;;  %s290_s20 = int_to_ptr.vmem [resolvable:$true] %s289_s20  ;;  %s316_s14 = int_to_ptr.vmem [resolvable:$true] %s315_s14 }
  0x50   : > { %s2285_s1 = scalar_lea.vmem %s290_s20, 512  ;;  %p2973_p5 = pneg %p2582_p6 }
  0x51   : > { %p2286_p9 = scmp.ne.s32.totalorder %s290_s20, %s2285_s1  ;;  %p2293_p12 = scmp.lt.s32.totalorder %s290_s20, %s290_s20 }
  0x52   : > { %p2294_p10 = scmp.lt.s32.totalorder %s2285_s1, %s2285_s1 }
  0x53   : > { %p2288_p8 = pnand %p2286_p9, %p2973_p5 }
  0x54   : > { %p2295_p1 = por %p2294_p10, %p2293_p12 }
  0x55   : > { %p2289_p2 = pneg %p2288_p8 }
  0x57   : > { %p2296_p7 = pnand %p2295_p1, %p2289_p2 }
  0x59   : > { %2299 = shalt.err (!%p2296_p7)
}
  0x5a   : > { %s2974_s10 = smov 8   ;;  %s2975_s4 = smov 128  }
  0x5b   : > { %s2976_s5 = sld [smem:[#allocation30_spill]]  ;;  %s2311_s24 = scalar_lea.vmem %s316_s14, 512 }
  0x5c   : > { %p2312_p4 = scmp.ne.s32.totalorder %s316_s14, %s2311_s24  ;;  %p2977_p8 = pmov %p2973_p5 }
  0x5d   : > { %p2319_p12 = scmp.lt.s32.totalorder %s316_s14, %s316_s14  ;;  %p2320_p2 = scmp.lt.s32.totalorder %s2311_s24, %s2311_s24 }
  0x5e   : > { %p2314_p13 = pnand %p2312_p4, %p2977_p8 }
  0x5f   : > { %p2321_p5 = por %p2320_p2, %p2319_p12 }
  0x60   : > { %p2315_p9 = pneg %p2314_p13 }
  0x61   : > { %2087 = dma.hbm_to_vmem [thread:$0]  (!%p2582_p6), %s2976_s5, 512, %s290_s20, [#allocation11], %s2975_s4, %s2975_s4, %s2974_s10  }
  0x62   : > { %p2322_p10 = pnand %p2321_p5, %p2315_p9 }
  0x64   : > { %2325 = shalt.err (!%p2322_p10)
}
  0x65   : > { %2093 = dma.hbm_to_vmem [thread:$0]  (!%p2582_p6), %s2936_s7, 512, %s316_s14, [#allocation14], %s2975_s4, %s2975_s4, %s2974_s10  }
  0x66   : > { %s339_s26 = scalar_lea.hbm %s2929_s0, %s2647_s25  ;;  %s333_s13 = scalar_lea.vmem [#allocation4], %s2651_s17 }
  0x67   : > { %s341_s22 = sshll.u32 %s333_s13, 4  ;;  %s375_s5 = scalar_lea.hbm %s2931_s2, %s2647_s25  ;;  %s342_s22 = int_to_ptr.vmem [resolvable:$true] %s341_s22 }
  0x68   : > { %s2978_s23 = sand.u32 1, %s2462_s29   ;;  %s2339_s1 = scalar_lea.vmem %s342_s22, 128 }
  0x69   : > { %s330_s27 = scalar_lea.sflag [#allocation5], %s2978_s23  ;;  %p2340_p1 = scmp.ne.s32.totalorder %s342_s22, %s2339_s1 }
  0x6a   : > { %p2979_p7 = pneg %p2655_p0  ;;  %s2483_s14 = smov [#allocation4]  }
  0x6b   : > { %s2344_s10 = sshll.u32 %s2483_s14, 4  ;;  %s2345_s10 = int_to_ptr.vmem [resolvable:$false] %s2344_s10 }
  0x6c   : > { %p2342_p4 = pnand %p2340_p1, %p2979_p7  ;;  %s2346_s4 = scalar_lea.vmem %s2345_s10, 256 }
  0x6d   : > { %p2347_p6 = scmp.lt.s32.totalorder %s342_s22, %s2345_s10  ;;  %p2348_p13 = scmp.lt.s32.totalorder %s2346_s4, %s2339_s1 }
  0x6e   : > { %p2343_p8 = pneg %p2342_p4 }
  0x6f   : > { %p2349_p9 = por %p2348_p13, %p2347_p6 }
  0x71   : > { %p2350_p12 = pnand %p2349_p9, %p2343_p8 }
  0x73   : > { %2353 = shalt.err (!%p2350_p12)
}
  0x74   : > { %2097 = dma.hbm_to_vmem [thread:$0]  (!%p2655_p0), %s339_s26, 128, %s342_s22, %s330_s27  }
  0x75   : > { %s370_s23 = scalar_lea.vmem [#allocation9], %s2651_s17  ;;  %p2980_p5 = pmov %p2979_p7 }
  0x76   : > { %s377_s16 = sshll.u32 %s370_s23, 4  ;;  %s2484_s20 = smov [#allocation9]   ;;  %s378_s16 = int_to_ptr.vmem [resolvable:$true] %s377_s16 }
  0x77   : > { %s2367_s6 = scalar_lea.vmem %s378_s16, 128  ;;  %s2372_s13 = sshll.u32 %s2484_s20, 4  ;;  %s2373_s13 = int_to_ptr.vmem [resolvable:$false] %s2372_s13 }
  0x78   : > { %p2368_p2 = scmp.ne.s32.totalorder %s378_s16, %s2367_s6  ;;  %s2374_s15 = scalar_lea.vmem %s2373_s13, 256 }
  0x79   : > { %p2375_p7 = scmp.lt.s32.totalorder %s378_s16, %s2373_s13  ;;  %p2376_p4 = scmp.lt.s32.totalorder %s2374_s15, %s2367_s6 }
  0x7a   : > { %p2370_p10 = pnand %p2368_p2, %p2980_p5 }
  0x7b   : > { %p2377_p8 = por %p2376_p4, %p2375_p7 }
  0x7c   : > { %p2371_p1 = pneg %p2370_p10 }
  0x7e   : > { %p2378_p6 = pnand %p2377_p8, %p2371_p1 }
  0x80   : > { %2381 = shalt.err (!%p2378_p6)
}
  0x81   : > { %2103 = dma.hbm_to_vmem [thread:$0]  (!%p2655_p0), %s375_s5, 128, %s378_s16, %s2665_s9  }
  0x82   : > { %392 = sbr.rel (%p2573_p3) target bundleno = 2596 (0xa24), region = 52  ;;  %s2728_s26 = sand.u32 (!%p2573_p3), 1, %s2458_s28  }
  0x83   : > { %s2731_s22 = sshll.u32 (!%p2573_p3), %s2728_s26, 3  ;;  %s395_s19 = scalar_lea.sflag (!%p2573_p3), [#allocation5], %s2728_s26 }
  0x84   : > { %s398_s24 = scalar_lea.vmem (!%p2573_p3), [#allocation4], %s2731_s22 }
  0x87   : > { %2433 = dma.done.wait (%p2629_p11), %s395_s19, 128  }
  0x88   : > { %2435 = vsyncadd (%p2629_p11), %s395_s19, 4294967168  ;;  %s403_s5 = sand.u32 1, %s2568_s11   ;;  %s407_s12 = scalar_lea.vmem [#allocation7], %s2731_s22 }
  0x89   : > { %s404_s9 = scalar_lea.sflag [#allocation8], %s403_s5 }
  0x8a   : > { %2437 = dma.done.wait (%p2629_p11), %s404_s9, 256  }
  0x8b   : > { %2439 = vsyncadd (%p2629_p11), %s404_s9, 4294967040  ;;  %s416_s25 = scalar_lea.vmem [#allocation9], %s2731_s22  ;;  %p2981_p3 = scmp.eq.s32.totalorder %s2568_s11, 0 }
  0x8d   : > { %2441 = dma.done.wait (%p2981_p3), [#allocation11], 1024   ;;  %p2982_p0 = pmov %p2981_p3 }
  0x8f   : > { %2443 = vsyncadd (%p2982_p0), [#allocation11], 4294966272  ;;  %p2983_p13 = pmov %p2982_p0 }
  0x90   : > { %p2984_p9 = pmov %p2982_p0 }
  0x91   : > { %2445 = dma.done.wait (%p2983_p13), [#allocation14], 1024  }
  0x92   : > { %2447 = vsyncadd (%p2984_p9), [#allocation14], 4294966272  ;;  %v2485_v0 = vmov 0.0   ;;  %vm2486_vm0 = vmmov 0   ;;  %v489_v1 = vld [vmem:[#allocation12 + $0x18] sm:$0xff]  ;;  %v488_v2 = vld [vmem:[#allocation12 + $0x10] sm:$0xff]  ;;  %v810_v26 = vlaneseq }
  0x93   : > { %1964 = vmatprep.subr.mxu0 %v2485_v0  ;;  %1972 = vmatprep.mubr.msk.f32.mxu0 %vm2486_vm0, %v2485_v0  ;;  %v487_v3 = vld [vmem:[#allocation12 + $0x8] sm:$0xff]  ;;  %v486_v4 = vld [vmem:[#allocation12] sm:$0xff]  ;;  %vm490_vm1 = vcmask 261120   ;;  %v648_v6 = vld [vmem:[#allocation10 + $0x18] sm:$0xff]  ;;  %vm732_vm2 = vcmask 64512   ;;  %s2487_s11 = smov 120  }
  0x94   : > { %1975 = vmatprep.subr.mxu1 %v2485_v0  ;;  %1983 = vmatprep.mubr.msk.f32.mxu1 %vm2486_vm0, %v2485_v0  ;;  %v485_v5 = vld [vmem:[%s407_s12] sm:$0xff]  ;;  %v647_v7 = vld [vmem:[#allocation10 + $0x10] sm:$0xff]  ;;  %v569_v11 = vld [vmem:[#allocation13 + $0x18] sm:$0xff]  ;;  %p478_p11 = scmp.lt.s32.totalorder %s2466_s30, 1  ;;  %v811_v28 = vshrl.u32 %v810_v26, 7  ;;  %v2488_v31 = vmov 0  }
  0x95   : > { %1965 = vmatpush3.msra.mxu0 %v489_v1  ;;  %v646_v8 = vld [vmem:[#allocation10 + $0x8] sm:$0xff]  ;;  %v645_v9 = vld [vmem:[#allocation10] sm:$0xff]  ;;  %v644_v10 = vld [vmem:[%s398_s24] sm:$0xff]  ;;  %1976 = vmatpush3.msra.mxu1 %v569_v11  ;;  %s2489_s4 = smov 112   ;;  %s2490_s23 = smov 104  }
  0x96   : > { %1966 = vmatprep.subr.mxu0 %v2485_v0  ;;  %1977 = vmatprep.subr.mxu1 %v2485_v0  ;;  %v568_v12 = vld [vmem:[#allocation13 + $0x10] sm:$0xff]  ;;  %v567_v13 = vld [vmem:[#allocation13 + $0x8] sm:$0xff]  ;;  %v566_v14 = vld [vmem:[#allocation13] sm:$0xff]  ;;  %s479_s18 = scalar_select %p478_p11, %s2466_s30, 1  ;;  %v812_v30 = vsub.s32 0, %v811_v28 }
  0x97   : > { %1967 = vmatpush3.msra.mxu0 %v488_v2  ;;  %1978 = vmatpush3.msra.mxu1 %v568_v12  ;;  %v565_v15 = vld [vmem:[%s416_s25] sm:$0xff]  ;;  %v727_v55 = vld [vmem:[#allocation15 + $0x8] sm:$0xff]  ;;  %v726_v60 = vld [vmem:[#allocation15] sm:$0xff]  ;;  %s1922_s16 = sshll.u32 %s2466_s30, 7  ;;  %s477_s6 = scalar_lea.vmem [#allocation16], %s2731_s22 }
  0x98   : > { %1968 = vmatprep.subr.mxu0 %v2485_v0  ;;  %1979 = vmatprep.subr.mxu1 %v2485_v0  ;;  %s480_s10 = scalar_lea.vmem %s2932_s3, %s479_s18  ;;  %s1709_s20 = sshll.u32 %s477_s6, 4  ;;  %s1710_s20 = int_to_ptr.vmem [resolvable:$true] %s1709_s20 }
  0x99   : > { %1969 = vmatpush3.msra.mxu0 %v487_v3  ;;  %1980 = vmatpush3.msra.mxu1 %v567_v13  ;;  %v730_v27 = vld [vmem:[%s480_s10] sm:$0x1]  ;;  %s2886_s27 = scalar_lea.hbm %s2937_s8, %s1922_s16  ;;  %s1695_s17 = scalar_lea.sflag [#allocation6], %s2728_s26 }
  0x9a   : > { %1970 = vmatprep.subr.mxu0 %v2485_v0  ;;  %1981 = vmatprep.subr.mxu1 %v2485_v0  ;;  %vm731_vm3 = vcmp.eq.s32.totalorder %v730_v27, 0  ;;  %s2382_s19 = scalar_lea.vmem %s1710_s20, 128  ;;  %p2985_p2 = scmp.ne.s32.totalorder %s2967_s21, 0 }
  0x9b   : > { %1971 = vmatpush3.msra.mxu0 %v486_v4  ;;  %1982 = vmatpush3.msra.mxu1 %v566_v14  ;;  %v809_v32 = vsel %vm731_vm3, 1, %v2488_v31  ;;  %p2383_p12 = scmp.ne.s32.totalorder %s1710_s20, %s2382_s19  ;;  %s2491_s30 = smov [#allocation16]  }
  0x9c   : > { %1973 = vmatmul.mubr.msk.f32.vlgmr.msra.gmra.mxu0 %vm490_vm1, %v485_v5  ;;  %1986 = vmatprep.subr.mxu0 %v2485_v0  ;;  %v2816_v33 = vrot.slane %v809_v32, %v812_v30  ;;  %s2386_s22 = sshll.u32 %s2491_s30, 4  ;;  %s2387_s22 = int_to_ptr.vmem [resolvable:$false] %s2386_s22 }
  0x9d   : > { %1987 = vmatpush3.msra.mxu0 %v648_v6  ;;  %1994 = vmatprep.mubr.msk.f32.mxu0 %vm2486_vm0, %v2485_v0  ;;  %p2384_p5 = pnand %p2383_p12, %p2985_p2  ;;  %s2388_s24 = scalar_lea.vmem %s2387_s22, 256 }
  0x9e   : > { %1988 = vmatprep.subr.mxu0 %v2485_v0  ;;  %1984 = vmatmul.mubr.msk.f32.vlgmr.msra.gmra.mxu1 %vm490_vm1, %v565_v15  ;;  %vm814_vm4 = vcmp.eq.s32.totalorder %v2816_v33, 1  ;;  %p2389_p1 = scmp.lt.s32.totalorder %s1710_s20, %s2387_s22  ;;  %p2390_p7 = scmp.lt.s32.totalorder %s2388_s24, %s2382_s19 }
  0x9f   : > { %1989 = vmatpush3.msra.mxu0 %v647_v7  ;;  %1997 = vmatprep.subr.mxu1 %v2485_v0  ;;  %p2385_p10 = pneg %p2384_p5 }
  0xa0   : > { %1990 = vmatprep.subr.mxu0 %v2485_v0  ;;  %1999 = vmatprep.mubr.msk.f32.mxu1 %vm2486_vm0, %v2485_v0  ;;  %p2391_p4 = por %p2390_p7, %p2389_p1 }
  0xa1   : > { %1991 = vmatpush3.msra.mxu0 %v646_v8 }
  0xa2   : > { %1992 = vmatprep.subr.mxu0 %v2485_v0  ;;  %p2392_p8 = pnand %p2391_p4, %p2385_p10 }
  0xa3   : > { %1993 = vmatpush3.msra.mxu0 %v645_v9 }
  0xa4   : > { %1995 = vmatmul.mubr.msk.f32.vlgmr.msra.gmra.mxu0 %vm490_vm1, %v644_v10  ;;  %2007 = vmatprep.subr.mxu0 %v2485_v0 }
  0xa5   : > { %2009 = vmatprep.mubr.msk.f32.mxu0 %vm2486_vm0, %v2485_v0 }
 0x15c   : > { %v560_v16 = vpop.f32.mrf.mxu0 }
 0x15d   : > { %564 = vst.msk [vmem:[#allocation2] sm:$0xff] %vm490_vm1, %v560_v16 }
 0x15e   : > { %v1974_v17 = vpop.f32.mrf.mxu0  ;;  %v639_v22 = vpop.f32.mrf.mxu1 }
 0x15f   : > { %643 = vst.msk [vmem:[#allocation3] sm:$0xff] %vm490_vm1, %v639_v22 }
 0x160   : > { %v1985_v23 = vpop.f32.mrf.mxu1 }
 0x164   : > { %v719_v18 = vpop.f32.mrf.mxu0  ;;  %v2786_v19 = vld [vmem:[#allocation2] sm:$0xff] }
 0x165   : > { %v2788_v20 = vmul.f32 0.35355338, %v719_v18  ;;  %902 = vrot.lane.b32.xlu0 %v2786_v19, %s2487_s11  ;;  %1998 = vmatpush3.xpose.msk.msra.mxu1 %vm732_vm2, %v2786_v19 }
 0x166   : > { %v1996_v21 = vpop.f32.mrf.mxu0  ;;  %2002 = vmatprep.subr.mxu1 %v2485_v0  ;;  %v2812_v29 = vld [vmem:[#allocation3] sm:$0xff] }
 0x168   : > { %2000 = vmatmul.mubr.msk.f32.vlgmr.msra.gmra.mxu1 %vm732_vm2, %v2788_v20 }
 0x169   : > { %900 = vrot.lane.b32.xlu0 %v2788_v20, %s2487_s11  ;;  %2004 = vmatprep.mubr.msk.f32.mxu1 %vm2486_vm0, %v2485_v0 }
 0x16a   : > { %2003 = vmatpush3.msra.mxu1 %v2812_v29 }
 0x16b   : > { %2012 = vmatprep.subr.mxu1 %v2485_v0 }
 0x1d7   : > { %v903_v24 = vpop.permute.xlu0 %902 }
 0x1d8   : > { %2008 = vmatpush3.xpose.msk.msra.mxu0 %vm732_vm2, %v903_v24 }
 0x1d9   : > { %2017 = vmatprep.subr.mxu0 %v2485_v0 }
 0x1db   : > { %v901_v25 = vpop.permute.xlu0 %900 }
 0x1dc   : > { %2010 = vmatmul.mubr.msk.f32.vlgmr.msra.gmra.mxu0 %vm732_vm2, %v901_v25 }
 0x1dd   : > { %2019 = vmatprep.mubr.msk.f32.mxu0 %vm2486_vm0, %v2485_v0  ;;  %2018 = vmatpush3.msra.mxu0 %v727_v55 }
 0x1de   : > { %2027 = vmatprep.subr.mxu0 %v2485_v0 }
 0x228   : > { %v805_v34 = vpop.f32.mrf.mxu1 }
 0x229   : > { %v815_v35 = vsel %vm814_vm4, -1e+09, %v805_v34 }
 0x22a   : > { %v2001_v36 = vpop.f32.mrf.mxu1  ;;  %v816_v37 = vsel %vm732_vm2, %v815_v35, -inf }
 0x22b   : > { %817 = vmax.xlane.f32.xlu1 %v816_v37 }
 0x29c   : > { %v974_v38 = vpop.f32.mrf.mxu0 }
 0x29d   : > { %v978_v39 = vsel %vm814_vm4, -1e+09, %v974_v38 }
 0x29e   : > { %v2011_v40 = vpop.f32.mrf.mxu0  ;;  %v979_v41 = vsel %vm732_vm2, %v978_v39, -inf }
 0x29f   : > { %980 = vmax.xlane.f32.xlu1 %v979_v41 }
 0x2b4   : > { %v818_v42 = vpop.xlane.xlu1 %817 }
 0x2b5   : > { %v819_v43 = vsub.f32 %v815_v35, %v818_v42 }
 0x2b7   : > { %v820_v44 = vmul.f32 1.442695, %v819_v43 }
 0x2b9   : > { %2178 = vpow2.f32 %v820_v44 }
 0x2c6   : > { %v2179_v45 = vpop.eup %2178 }
 0x2c7   : > { %v822_v46 = vsel %vm732_vm2, %v2179_v45, 0.0 }
 0x2c8   : > { %823 = vadd.xlane.f32.xlu0 %v822_v46 }
 0x2de   : > { %1303 = vrot.lane.b32.xlu0 %v2812_v29, %s2489_s4 }
 0x328   : > { %v981_v47 = vpop.xlane.xlu1 %980 }
 0x329   : > { %v982_v48 = vsub.f32 %v978_v39, %v981_v47 }
 0x32b   : > { %v983_v49 = vmul.f32 1.442695, %v982_v48 }
 0x32d   : > { %2180 = vpow2.f32 %v983_v49 }
 0x33a   : > { %v2181_v50 = vpop.eup %2180 }
 0x33b   : > { %v985_v51 = vsel %vm732_vm2, %v2181_v50, 0.0 }
 0x33c   : > { %986 = vadd.xlane.f32.xlu1 %v985_v51 }
 0x34d   : > { %991 = vrot.lane.b32.xlu1 %v2812_v29, %s2487_s11 }
 0x351   : > { %v824_v52 = vpop.xlane.xlu0 %823  ;;  %1215 = vrot.lane.b32.xlu1 %v2786_v19, %s2489_s4 }
 0x352   : > { %2182 = vrcp.f32 %v824_v52 }
 0x355   : > { %1213 = vrot.lane.b32.xlu1 %v2788_v20, %s2489_s4  ;;  %v1304_v62 = vpop.permute.xlu0 %1303 }
 0x35f   : > { %v2183_v53 = vpop.eup %2182 }
 0x360   : > { %v826_v54 = vmul.f32 %v2183_v53, %v2179_v45 }
 0x362   : > { %2005 = vmatmul.mubr.msk.f32.vlgmr.msra.gmra.mxu1 %vm732_vm2, %v826_v54 }
 0x363   : > { %2014 = vmatprep.mubr.msk.f32.mxu1 %vm2486_vm0, %v2485_v0 }
 0x3c5   : > { %v987_v56 = vpop.xlane.xlu1 %986 }
 0x3c6   : > { %2184 = vrcp.f32 %v987_v56 }
 0x3c9   : > { %v992_v57 = vpop.permute.xlu1 %991 }
 0x3ca   : > { %2013 = vmatpush3.msra.mxu1 %v992_v57 }
 0x3cb   : > { %2022 = vmatprep.subr.mxu1 %v2485_v0 }
 0x3cd   : > { %v1216_v1 = vpop.permute.xlu1 %1215 }
 0x3d1   : > { %v1214_v4 = vpop.permute.xlu1 %1213 }
 0x3d3   : > { %v2185_v58 = vpop.eup %2184 }
 0x3d4   : > { %v989_v59 = vmul.f32 %v2185_v58, %v2181_v50 }
 0x3d6   : > { %2015 = vmatmul.mubr.msk.f32.vlgmr.msra.gmra.mxu1 %vm732_vm2, %v989_v59 }
 0x3d7   : > { %2023 = vmatpush3.msra.mxu1 %v726_v60  ;;  %2024 = vmatprep.mubr.msk.f32.mxu1 %vm2486_vm0, %v2485_v0 }
 0x3d8   : > { %2032 = vmatprep.subr.mxu1 %v2485_v0 }
 0x422   : > { %v896_v61 = vpop.f32.mrf.mxu1 }
 0x423   : > { %2025 = vmatmul.mubr.msk.f32.vlgmr.msra.gmra.mxu1 %vm732_vm2, %v896_v61 }
 0x424   : > { %2033 = vmatpush3.msra.mxu1 %v1304_v62  ;;  %v2006_v63 = vpop.f32.mrf.mxu1  ;;  %2034 = vmatprep.mubr.msk.f32.mxu1 %vm2486_vm0, %v2485_v0 }
 0x425   : > { %2042 = vmatprep.subr.mxu1 %v2485_v0 }
 0x496   : > { %v1063_v2 = vpop.f32.mrf.mxu1 }
 0x497   : > { %2020 = vmatmul.mubr.msk.f32.vlgmr.msra.gmra.mxu0 %vm732_vm2, %v1063_v2 }
 0x498   : > { %2028 = vmatpush3.xpose.msk.msra.mxu0 %vm732_vm2, %v1216_v1  ;;  %v2016_v3 = vpop.f32.mrf.mxu1  ;;  %2029 = vmatprep.mubr.msk.f32.mxu0 %vm2486_vm0, %v2485_v0 }
 0x499   : > { %2037 = vmatprep.subr.mxu0 %v2485_v0 }
 0x49b   : > { %2030 = vmatmul.mubr.msk.f32.vlgmr.msra.gmra.mxu0 %vm732_vm2, %v1214_v4 }
 0x49c   : > { %2039 = vmatprep.mubr.msk.f32.mxu0 %vm2486_vm0, %v2485_v0 }
 0x4e3   : > { %v1209_v5 = vpop.f32.mrf.mxu1 }
 0x4e5   : > { %v2026_v6 = vpop.f32.mrf.mxu1 }
 0x557   : > { %v1136_v7 = vpop.f32.mrf.mxu0 }
 0x558   : > { %v1210_v33 = vadd.f32 %v1209_v5, %v1136_v7 }
 0x559   : > { %v2021_v8 = vpop.f32.mrf.mxu0 }
 0x55b   : > { %v1287_v9 = vpop.f32.mrf.mxu0 }
 0x55c   : > { %v1291_v10 = vsel %vm814_vm4, -1e+09, %v1287_v9 }
 0x55d   : > { %v2031_v11 = vpop.f32.mrf.mxu0  ;;  %v1292_v12 = vsel %vm732_vm2, %v1291_v10, -inf }
 0x55e   : > { %1293 = vmax.xlane.f32.xlu1 %v1292_v12 }
 0x5e7   : > { %v1294_v13 = vpop.xlane.xlu1 %1293 }
 0x5e8   : > { %v1295_v14 = vsub.f32 %v1291_v10, %v1294_v13 }
 0x5ea   : > { %v1296_v15 = vmul.f32 1.442695, %v1295_v14 }
 0x5ec   : > { %2186 = vpow2.f32 %v1296_v15 }
 0x5f9   : > { %v2187_v16 = vpop.eup %2186 }
 0x5fa   : > { %v1298_v17 = vsel %vm732_vm2, %v2187_v16, 0.0 }
 0x5fb   : > { %1299 = vadd.xlane.f32.xlu0 %v1298_v17 }
 0x611   : > { %1455 = vrot.lane.b32.xlu0 %v2786_v19, %s2490_s23  ;;  %v728_v19 = vld [vmem:[#allocation15 + $0x10] sm:$0xff] }
 0x612   : > { %2038 = vmatpush3.msra.mxu0 %v728_v19 }
 0x613   : > { %2047 = vmatprep.subr.mxu0 %v2485_v0 }
 0x615   : > { %1453 = vrot.lane.b32.xlu0 %v2788_v20, %s2490_s23 }
 0x684   : > { %v1300_v18 = vpop.xlane.xlu0 %1299 }
 0x685   : > { %2188 = vrcp.f32 %v1300_v18 }
 0x688   : > { %v1456_v22 = vpop.permute.xlu0 %1455 }
 0x68c   : > { %v1454_v24 = vpop.permute.xlu0 %1453 }
 0x692   : > { %v2189_v21 = vpop.eup %2188 }
 0x693   : > { %v1302_v23 = vmul.f32 %v2189_v21, %v2187_v16 }
 0x695   : > { %2035 = vmatmul.mubr.msk.f32.vlgmr.msra.gmra.mxu1 %vm732_vm2, %v1302_v23 }
 0x696   : > { %2043 = vmatpush3.xpose.msk.msra.mxu1 %vm732_vm2, %v1456_v22  ;;  %2044 = vmatprep.mubr.msk.f32.mxu1 %vm2486_vm0, %v2485_v0 }
 0x697   : > { %2052 = vmatprep.subr.mxu1 %v2485_v0 }
 0x699   : > { %2045 = vmatmul.mubr.msk.f32.vlgmr.msra.gmra.mxu1 %vm732_vm2, %v1454_v24 }
 0x69a   : > { %2054 = vmatprep.mubr.msk.f32.mxu1 %vm2486_vm0, %v2485_v0 }
 0x755   : > { %v1375_v20 = vpop.f32.mrf.mxu1 }
 0x756   : > { %2040 = vmatmul.mubr.msk.f32.vlgmr.msra.gmra.mxu0 %vm732_vm2, %v1375_v20 }
 0x757   : > { %v2036_v25 = vpop.f32.mrf.mxu1  ;;  %2049 = vmatprep.mubr.msk.f32.mxu0 %vm2486_vm0, %v2485_v0  ;;  %v729_v0 = vld [vmem:[#allocation15 + $0x18] sm:$0xff] }
 0x758   : > { %2053 = vmatpush3.msra.mxu1 %v729_v0 }
 0x759   : > { %v1527_v26 = vpop.f32.mrf.mxu1 }
 0x75a   : > { %v1531_v27 = vsel %vm814_vm4, -1e+09, %v1527_v26 }
 0x75b   : > { %v2046_v28 = vpop.f32.mrf.mxu1  ;;  %v1532_v30 = vsel %vm732_vm2, %v1531_v27, -inf }
 0x75c   : > { %1533 = vmax.xlane.f32.xlu0 %v1532_v30 }
 0x7e5   : > { %v1534_v31 = vpop.xlane.xlu0 %1533 }
 0x7e6   : > { %v1535_v32 = vsub.f32 %v1531_v27, %v1534_v31 }
 0x7e8   : > { %v1536_v34 = vmul.f32 1.442695, %v1535_v32 }
 0x7ea   : > { %2190 = vpow2.f32 %v1536_v34 }
 0x7f7   : > { %v2191_v35 = vpop.eup %2190 }
 0x7f8   : > { %v1538_v36 = vsel %vm732_vm2, %v2191_v35, 0.0 }
 0x7f9   : > { %1539 = vadd.xlane.f32.xlu1 %v1538_v36 }
 0x80a   : > { %1543 = vrot.lane.b32.xlu1 %v2812_v29, %s2490_s23 }
 0x816   : > { %v1448_v37 = vpop.f32.mrf.mxu0 }
 0x817   : > { %v1452_v38 = vadd.f32 %v1448_v37, %v1210_v33 }
 0x818   : > { %v2041_v39 = vpop.f32.mrf.mxu0 }
 0x882   : > { %v1540_v40 = vpop.xlane.xlu1 %1539 }
 0x883   : > { %2192 = vrcp.f32 %v1540_v40 }
 0x886   : > { %v1544_v41 = vpop.permute.xlu1 %1543 }
 0x887   : > { %2048 = vmatpush3.msra.mxu0 %v1544_v41 }
 0x890   : > { %v2193_v42 = vpop.eup %2192 }
 0x891   : > { %v1542_v43 = vmul.f32 %v2193_v42, %v2191_v35 }
 0x893   : > { %2050 = vmatmul.mubr.msk.f32.vlgmr.msra.gmra.mxu0 %vm732_vm2, %v1542_v43 }
 0x953   : > { %v1615_v44 = vpop.f32.mrf.mxu0 }
 0x954   : > { %2055 = vmatmul.mubr.msk.f32.vlgmr.msra.gmra.mxu1 %vm732_vm2, %v1615_v44 }
 0x955   : > { %v2051_v29 = vpop.f32.mrf.mxu0 }
 0xa14   : > { %v1688_v45 = vpop.f32.mrf.mxu1 }
 0xa15   : > { %v1692_v46 = vadd.f32 %v1688_v45, %v1452_v38 }
 0xa16   : > { %v2056_v47 = vpop.f32.mrf.mxu1 }
 0xa17   : > { %1693 = vst.msk [vmem:[%s477_s6] sm:$0xff] %vm490_vm1, %v1692_v46 }
 0xa18   : > { %2395 = shalt.err (!%p2392_p8)
}
 0xa19   : > { %s2396_s5 = scalar_lea.hbm %s2886_s27, 128  ;;  %s2400_s12 = scalar_lea.hbm %s2937_s8, 256 }
 0xa1a   : > { %p2397_p6 = scmp.ne.s32.totalorder %s2886_s27, %s2396_s5  ;;  %p2401_p13 = scmp.lt.s32.totalorder %s2886_s27, %s2937_s8 }
 0xa1b   : > { %p2402_p9 = scmp.lt.s32.totalorder %s2400_s12, %s2396_s5 }
 0xa1c   : > { %p2398_p3 = pnand %p2397_p6, %p2985_p2 }
 0xa1d   : > { %p2403_p11 = por %p2402_p9, %p2401_p13 }
 0xa1e   : > { %p2399_p0 = pneg %p2398_p3 }
 0xa20   : > { %p2404_p12 = pnand %p2403_p11, %p2399_p0 }
 0xa22   : > { %2407 = shalt.err (!%p2404_p12)
}
 0xa23   : > { %2079 = dma.vmem_to_hbm [thread:$0]  (%p2985_p2), %s1710_s20, 128, %s2886_s27, %s1695_s17  }
 0xa24 PF: > { %s2986_s18 = sld [smem:[#allocation22_spill]] }
 0xa25   : > { %s2987_s1 = sld [smem:[#allocation27_spill]] }
 0xa26   : > { %s2988_s14 = sld [smem:[#allocation24_spill]] }
 0xa2a   : > { %s1721_s10 = sand.u32 1, %s2986_s18  }
 0xa2b   : > { %p2989_p5 = scmp.ne.s32.totalorder %s2987_s1, 0  ;;  %s1722_s4 = scalar_lea.sflag [#allocation6], %s1721_s10 }
 0xa2c   : > { %p2990_p10 = scmp.ge.s32.totalorder %s2988_s14, 2 }
 0xa2e   : > { %p2105_p1 = pnand %p2990_p10, %p2989_p5 }
 0xa30   : > { %p2106_p7 = pneg %p2105_p1 }
 0xa32   : > { %2449 = dma.done.wait (%p2106_p7), %s1722_s4, 128  }
 0xa33   : > { %2451 = vsyncadd (%p2106_p7), %s1722_s4, 4294967168  ;;  %s29_s10 = sadd.s32 1, %s2988_s14   ;;  %s2991_s21 = sld [smem:[#allocation26_spill]] }
 0xa34   : > { %p26_p4 = scmp.ge.s32.totalorder %s29_s10, 4   ;;  %s2992_s30 = sld [smem:[#allocation23_spill]] }
 0xa35   : > { %s2993_s9 = sld [smem:[#allocation25_spill]]  ;;  %s2994_s27 = smov %s2458_s28 }
 0xa36   : > { %s2995_s28 = smov %s2462_s29  ;;  %28 = sbr.rel (!%p26_p4) target bundleno = 15 (0xf), region = 144 }
 0xa39   : > { %s2996_s29 = smov %s2991_s21 }
 0xa3b   :  { %1727 = vsyncpa [#allocation5], 1 }
 0xa3c   :  { %1729 = vsyncpa [#allocation5 + $0x1], 1 }
 0xa3d   :  { %1730 = vsyncpa [#allocation8], 1 }
 0xa3e   :  { %1732 = vsyncpa [#allocation8 + $0x1], 1 }
 0xa3f   :  { %1733 = vsyncpa [#allocation11], 1 }
 0xa40   :  { %1734 = vsyncpa [#allocation14], 1 }
 0xa41   :  { %1735 = vsyncpa [#allocation6], 1 }
 0xa42   :  { %1737 = vsyncpa [#allocation6 + $0x1], 1 }

// kernel: tpu_custom_call.1
= control target key start
LH: loop header
LB: loop body
LE: loop exit
PB: predicated region body
PF: predicated region fallthrough
CT: control target
= control target key end

     0   :  { %s2929_s0 = inlined_call_operand.hbm [shape: f32[2,8,32], index: 0, kind: input, shape index: {}]   ;;  %s2930_s1 = inlined_call_operand.hbm [shape: f32[2,8,32], index: 1, kind: input, shape index: {}]   ;;  %s2931_s2 = inlined_call_operand.hbm [shape: f32[2,8,32], index: 2, kind: input, shape index: {}]   ;;  %s2932_s3 = inlined_call_operand.vmem [shape: s32[2,1,8], index: 3, kind: input, shape index: {}]   ;;  %s2933_s4 = inlined_call_operand.hbm [shape: f32[32,32], index: 4, kind: input, shape index: {}]   ;;  %s2934_s5 = inlined_call_operand.hbm [shape: f32[32,32], index: 5, kind: input, shape index: {}]   ;;  %s2935_s6 = inlined_call_operand.hbm [shape: f32[32,32], index: 6, kind: input, shape index: {}]   ;;  %s2936_s7 = inlined_call_operand.hbm [shape: f32[32,32], index: 7, kind: input, shape index: {}]   ;;  %s2937_s8 = inlined_call_operand.hbm [shape: f32[2,8,32], index: 8, kind: output, shape index: {}]  }
   0x1   :  { %2953 = sst [smem:[#allocation28_spill]] %s2930_s1 }
   0x2   :  { %2954 = sst [smem:[#allocation29_spill]] %s2933_s4 }
   0x3   :  { %2955 = sst [smem:[#allocation30_spill]] %s2934_s5 }
   0x4   :  { %2956 = sst [smem:[#allocation31_spill]] %s2935_s6 }
   0x5   :  { %13 = vsyncpa [#allocation5], 0 }
   0x6   :  { %15 = vsyncpa [#allocation5 + $0x1], 0 }
   0x7   :  { %16 = vsyncpa [#allocation8], 0 }
   0x8   :  { %18 = vsyncpa [#allocation8 + $0x1], 0 }
   0x9   :  { %19 = vsyncpa [#allocation11], 0 }
   0xa   :  { %20 = vsyncpa [#allocation14], 0 }
   0xb   :  { %21 = vsyncpa [#allocation6], 0 }
   0xc   :  { %23 = vsyncpa [#allocation6 + $0x1], 0  ;;  %s2537_s27 = smov 0   ;;  %s2539_s28 = smov 0  }
   0xd   :  { %s2541_s29 = smov 0   ;;  %s2543_s30 = smov 0  }
   0xe   :  { %s2545_s9 = smov 0   ;;  %s2547_s10 = smov 0  }
   0xf LB: > { %2957 = sst [smem:[#allocation22_spill]] %s2454_s27  ;;  %s2568_s11 = sadd.s32 4294967295, %s2474_s10   ;;  %s2474_s10 = sphi %s2547_s10, %s29_s10   ;;  %s2470_s9 = sphi %s2545_s9, %s2993_s9   ;;  %s2466_s30 = sphi %s2543_s30, %s2992_s30   ;;  %s2462_s29 = sphi %s2541_s29, %s2996_s29   ;;  %s2458_s28 = sphi %s2539_s28, %s2995_s28   ;;  %s2454_s27 = sphi %s2537_s27, %s2994_s27  }
  0x10   : > { %2958 = sst [smem:[#allocation23_spill]] %s2470_s9  ;;  %p1881_p0 = scmp.ge.s32.totalorder %s2474_s10, 1 }
  0x11   : > { %2959 = sst [smem:[#allocation24_spill]] %s2474_s10  ;;  %p2947_p1 = scmp.eq.s32.totalorder %s2568_s11, 0 }
  0x12   : > { %p264_p2 = scmp.lt.s32.totalorder %s2474_s10, 3  ;;  %s2476_s13 = smov [#allocation10]  }
  0x13   : > { %s276_s14 = sshll.u32 %s2476_s13, 4  ;;  %s2477_s16 = smov [#allocation13]   ;;  %s277_s14 = int_to_ptr.vmem [resolvable:$true] %s276_s14 }
  0x14   : > { %p2573_p3 = pnand %p1881_p0, %p264_p2  ;;  %s302_s17 = sshll.u32 %s2477_s16, 4  ;;  %s303_s17 = int_to_ptr.vmem [resolvable:$true] %s302_s17 }
  0x15   : > { %s2205_s18 = scalar_lea.vmem %s277_s14, 512  ;;  %p2213_p11 = scmp.lt.s32.totalorder %s277_s14, %s277_s14 }
  0x16   : > { %p2081_p4 = pneg %p2573_p3  ;;  %p2206_p8 = scmp.ne.s32.totalorder %s277_s14, %s2205_s18 }
  0x17   : > { %p2214_p12 = scmp.lt.s32.totalorder %s2205_s18, %s2205_s18 }
  0x18   : > { %p2582_p6 = pnand %p2081_p4, %p2947_p1 }
  0x19   : > { %p2215_p13 = por %p2214_p12, %p2213_p11 }
  0x1a   : > { %p2948_p7 = pneg %p2582_p6 }
  0x1c   : > { %p2208_p9 = pnand %p2206_p8, %p2948_p7 }
  0x1e   : > { %p2209_p10 = pneg %p2208_p9 }
  0x20   : > { %p2216_p0 = pnand %p2215_p13, %p2209_p10 }
  0x22   : > { %2219 = shalt.err (!%p2216_p0)
}
  0x23   : > { %s2938_s19 = smov 128   ;;  %s2940_s20 = smov 8  }
  0x24   : > { %s2962_s4 = sld [smem:[#allocation29_spill]]  ;;  %s2231_s23 = scalar_lea.vmem %s303_s17, 512 }
  0x25   : > { %p2232_p2 = scmp.ne.s32.totalorder %s303_s17, %s2231_s23  ;;  %p2239_p9 = scmp.lt.s32.totalorder %s303_s17, %s303_s17 }
  0x26   : > { %p2240_p10 = scmp.lt.s32.totalorder %s2231_s23, %s2231_s23 }
  0x27   : > { %p2234_p4 = pnand %p2232_p2, %p2948_p7 }
  0x28   : > { %p2241_p11 = por %p2240_p10, %p2239_p9 }
  0x29   : > { %p2235_p8 = pneg %p2234_p4 }
  0x2a   : > { %2084 = dma.hbm_to_vmem [thread:$0]  (!%p2582_p6), %s2962_s4, 512, %s277_s14, [#allocation11], %s2938_s19, %s2938_s19, %s2940_s20  }
  0x2b   : > { %p2242_p12 = pnand %p2241_p11, %p2235_p8 }
  0x2d   : > { %2245 = shalt.err (!%p2242_p12)
}
  0x2e   : > { %s2963_s6 = sld [smem:[#allocation31_spill]]  ;;  %s1880_s26 = sadd.s32 4294967294, %s2474_s10  }
  0x2f   : > { %s41_s13 = sadd.s32 1, %s2470_s9  ;;  %s50_s14 = sadd.s32 1, %s2462_s29 }
  0x30   : > { %p43_p13 = scmp.ge.s32.totalorder %s41_s13, 2  ;;  %p57_p0 = scmp.ne.s32.totalorder %s2462_s29, %s2458_s28 }
  0x31   : > { %p58_p2 = scmp.eq.s32.totalorder %s2474_s10, 0  ;;  %p63_p8 = scmp.ne.s32.totalorder %s2458_s28, %s2454_s27 }
  0x32   : > { %s2998_s13 = smov (%p43_p13, %s41_s13), 0  ;;  %p251_p9 = scmp.eq.s32.totalorder %s2568_s11, 1 }
  0x33   : > { %2964 = sst [smem:[#allocation25_spill]] %s2998_s13  ;;  %p2618_p4 = por %p58_p2, %p57_p0 }
  0x34   : > { %2090 = dma.hbm_to_vmem [thread:$0]  (!%p2582_p6), %s2963_s6, 512, %s303_s17, [#allocation14], %s2938_s19, %s2938_s19, %s2940_s20  }
  0x35   : > { %s45_s17 = ssub.s32 %s2470_s9, %s2998_s13  ;;  %p2629_p11 = por %p2947_p1, %p63_p8 }
  0x36   : > { %p48_p10 = scmp.eq.s32.totalorder %s45_s17, 0  ;;  %p2633_p12 = por %p251_p9, %p57_p0 }
  0x37   : > { %p257_p13 = scmp.eq.s32.totalorder %s1880_s26, 1  ;;  %p2112_p5 = scmp.lt.s32.totalorder %s2474_s10, 2 }
  0x38   : > { %s2967_s21 = scalar_select %p2633_p12, 1, 0 }
  0x39   : > { %s2638_s22 = scalar_select %p48_p10, %s2462_s29, %s50_s14  }
  0x3a   : > { %p2640_p2 = por %p257_p13, %p63_p8  ;;  %s2944_s24 = sand.u32 1, %s2462_s29  }
  0x3b   : > { %2968 = sst [smem:[#allocation26_spill]] %s2638_s22  ;;  %s2647_s25 = sshll.u32 %s2470_s9, 7 }
  0x3c   : > { %s2969_s23 = scalar_select %p2640_p2, 1, 0 }
  0x3d   : > { %s2651_s17 = sshll.u32 %s2944_s24, 3  ;;  %p2655_p0 = pnand %p2112_p5, %p2618_p4 }
  0x3e   : > { %2970 = sst [smem:[#allocation27_spill]] %s2969_s23  ;;  %s348_s26 = sand.u32 1, %s2474_s10  }
  0x3f   : > { %s2972_s1 = sld [smem:[#allocation28_spill]]  ;;  %s352_s6 = scalar_lea.vmem [#allocation7], %s2651_s17 }
  0x40   : > { %s359_s13 = sshll.u32 %s352_s6, 4  ;;  %s2665_s9 = scalar_lea.sflag [#allocation8], %s348_s26  ;;  %s360_s13 = int_to_ptr.vmem [resolvable:$true] %s359_s13 }
  0x41   : > { %p2949_p8 = pneg %p2655_p0  ;;  %s2259_s16 = scalar_lea.vmem %s360_s13, 128 }
  0x42   : > { %p2260_p9 = scmp.ne.s32.totalorder %s360_s13, %s2259_s16  ;;  %s2480_s24 = smov [#allocation7]  }
  0x43   : > { %s2264_s22 = sshll.u32 %s2480_s24, 4  ;;  %s2265_s22 = int_to_ptr.vmem [resolvable:$false] %s2264_s22 }
  0x44   : > { %p2262_p5 = pnand %p2260_p9, %p2949_p8  ;;  %s2266_s10 = scalar_lea.vmem %s2265_s22, 256 }
  0x45   : > { %s357_s4 = scalar_lea.hbm %s2972_s1, %s2647_s25  ;;  %p2267_p10 = scmp.lt.s32.totalorder %s360_s13, %s2265_s22 }
  0x46   : > { %p2263_p4 = pneg %p2262_p5  ;;  %p2268_p13 = scmp.lt.s32.totalorder %s2266_s10, %s2259_s16 }
  0x48   : > { %p2269_p1 = por %p2268_p13, %p2267_p10 }
  0x4a   : > { %p2270_p7 = pnand %p2269_p1, %p2263_p4 }
  0x4c   : > { %2273 = shalt.err (!%p2270_p7)
}
  0x4d   : > { %2100 = dma.hbm_to_vmem [thread:$0]  (!%p2655_p0), %s357_s4, 128, %s360_s13, %s2665_s9  }
  0x4e   : > { %s2481_s6 = smov [#allocation12]   ;;  %s2482_s26 = smov [#allocation15]  }
  0x4f   : > { %s289_s20 = sshll.u32 %s2481_s6, 4  ;;  %s315_s14 = sshll.u32 %s2482_s26, 4  ;;  %s290_s20 = int_to_ptr.vmem [resolvable:$true] %s289_s20  ;;  %s316_s14 = int_to_ptr.vmem [resolvable:$true] %s315_s14 }
  0x50   : > { %s2285_s1 = scalar_lea.vmem %s290_s20, 512  ;;  %p2973_p5 = pneg %p2582_p6 }
  0x51   : > { %p2286_p9 = scmp.ne.s32.totalorder %s290_s20, %s2285_s1  ;;  %p2293_p12 = scmp.lt.s32.totalorder %s290_s20, %s290_s20 }
  0x52   : > { %p2294_p10 = scmp.lt.s32.totalorder %s2285_s1, %s2285_s1 }
  0x53   : > { %p2288_p8 = pnand %p2286_p9, %p2973_p5 }
  0x54   : > { %p2295_p1 = por %p2294_p10, %p2293_p12 }
  0x55   : > { %p2289_p2 = pneg %p2288_p8 }
  0x57   : > { %p2296_p7 = pnand %p2295_p1, %p2289_p2 }
  0x59   : > { %2299 = shalt.err (!%p2296_p7)
}
  0x5a   : > { %s2974_s10 = smov 8   ;;  %s2975_s4 = smov 128  }
  0x5b   : > { %s2976_s5 = sld [smem:[#allocation30_spill]]  ;;  %s2311_s24 = scalar_lea.vmem %s316_s14, 512 }
  0x5c   : > { %p2312_p4 = scmp.ne.s32.totalorder %s316_s14, %s2311_s24  ;;  %p2977_p8 = pmov %p2973_p5 }
  0x5d   : > { %p2319_p12 = scmp.lt.s32.totalorder %s316_s14, %s316_s14  ;;  %p2320_p2 = scmp.lt.s32.totalorder %s2311_s24, %s2311_s24 }
  0x5e   : > { %p2314_p13 = pnand %p2312_p4, %p2977_p8 }
  0x5f   : > { %p2321_p5 = por %p2320_p2, %p2319_p12 }
  0x60   : > { %p2315_p9 = pneg %p2314_p13 }
  0x61   : > { %2087 = dma.hbm_to_vmem [thread:$0]  (!%p2582_p6), %s2976_s5, 512, %s290_s20, [#allocation11], %s2975_s4, %s2975_s4, %s2974_s10  }
  0x62   : > { %p2322_p10 = pnand %p2321_p5, %p2315_p9 }
  0x64   : > { %2325 = shalt.err (!%p2322_p10)
}
  0x65   : > { %2093 = dma.hbm_to_vmem [thread:$0]  (!%p2582_p6), %s2936_s7, 512, %s316_s14, [#allocation14], %s2975_s4, %s2975_s4, %s2974_s10  }
  0x66   : > { %s339_s26 = scalar_lea.hbm %s2929_s0, %s2647_s25  ;;  %s333_s13 = scalar_lea.vmem [#allocation4], %s2651_s17 }
  0x67   : > { %s341_s22 = sshll.u32 %s333_s13, 4  ;;  %s375_s5 = scalar_lea.hbm %s2931_s2, %s2647_s25  ;;  %s342_s22 = int_to_ptr.vmem [resolvable:$true] %s341_s22 }
  0x68   : > { %s2978_s23 = sand.u32 1, %s2462_s29   ;;  %s2339_s1 = scalar_lea.vmem %s342_s22, 128 }
  0x69   : > { %s330_s27 = scalar_lea.sflag [#allocation5], %s2978_s23  ;;  %p2340_p1 = scmp.ne.s32.totalorder %s342_s22, %s2339_s1 }
  0x6a   : > { %p2979_p7 = pneg %p2655_p0  ;;  %s2483_s14 = smov [#allocation4]  }
  0x6b   : > { %s2344_s10 = sshll.u32 %s2483_s14, 4  ;;  %s2345_s10 = int_to_ptr.vmem [resolvable:$false] %s2344_s10 }
  0x6c   : > { %p2342_p4 = pnand %p2340_p1, %p2979_p7  ;;  %s2346_s4 = scalar_lea.vmem %s2345_s10, 256 }
  0x6d   : > { %p2347_p6 = scmp.lt.s32.totalorder %s342_s22, %s2345_s10  ;;  %p2348_p13 = scmp.lt.s32.totalorder %s2346_s4, %s2339_s1 }
  0x6e   : > { %p2343_p8 = pneg %p2342_p4 }
  0x6f   : > { %p2349_p9 = por %p2348_p13, %p2347_p6 }
  0x71   : > { %p2350_p12 = pnand %p2349_p9, %p2343_p8 }
  0x73   : > { %2353 = shalt.err (!%p2350_p12)
}
  0x74   : > { %2097 = dma.hbm_to_vmem [thread:$0]  (!%p2655_p0), %s339_s26, 128, %s342_s22, %s330_s27  }
  0x75   : > { %s370_s23 = scalar_lea.vmem [#allocation9], %s2651_s17  ;;  %p2980_p5 = pmov %p2979_p7 }
  0x76   : > { %s377_s16 = sshll.u32 %s370_s23, 4  ;;  %s2484_s20 = smov [#allocation9]   ;;  %s378_s16 = int_to_ptr.vmem [resolvable:$true] %s377_s16 }
  0x77   : > { %s2367_s6 = scalar_lea.vmem %s378_s16, 128  ;;  %s2372_s13 = sshll.u32 %s2484_s20, 4  ;;  %s2373_s13 = int_to_ptr.vmem [resolvable:$false] %s2372_s13 }
  0x78   : > { %p2368_p2 = scmp.ne.s32.totalorder %s378_s16, %s2367_s6  ;;  %s2374_s15 = scalar_lea.vmem %s2373_s13, 256 }
  0x79   : > { %p2375_p7 = scmp.lt.s32.totalorder %s378_s16, %s2373_s13  ;;  %p2376_p4 = scmp.lt.s32.totalorder %s2374_s15, %s2367_s6 }
  0x7a   : > { %p2370_p10 = pnand %p2368_p2, %p2980_p5 }
  0x7b   : > { %p2377_p8 = por %p2376_p4, %p2375_p7 }
  0x7c   : > { %p2371_p1 = pneg %p2370_p10 }
  0x7e   : > { %p2378_p6 = pnand %p2377_p8, %p2371_p1 }
  0x80   : > { %2381 = shalt.err (!%p2378_p6)
}
  0x81   : > { %2103 = dma.hbm_to_vmem [thread:$0]  (!%p2655_p0), %s375_s5, 128, %s378_s16, %s2665_s9  }
  0x82   : > { %392 = sbr.rel (%p2573_p3) target bundleno = 2596 (0xa24), region = 52  ;;  %s2728_s26 = sand.u32 (!%p2573_p3), 1, %s2458_s28  }
  0x83   : > { %s2731_s22 = sshll.u32 (!%p2573_p3), %s2728_s26, 3  ;;  %s395_s19 = scalar_lea.sflag (!%p2573_p3), [#allocation5], %s2728_s26 }
  0x84   : > { %s398_s24 = scalar_lea.vmem (!%p2573_p3), [#allocation4], %s2731_s22 }
  0x87   : > { %2433 = dma.done.wait (%p2629_p11), %s395_s19, 128  }
  0x88   : > { %2435 = vsyncadd (%p2629_p11), %s395_s19, 4294967168  ;;  %s403_s5 = sand.u32 1, %s2568_s11   ;;  %s407_s12 = scalar_lea.vmem [#allocation7], %s2731_s22 }
  0x89   : > { %s404_s9 = scalar_lea.sflag [#allocation8], %s403_s5 }
  0x8a   : > { %2437 = dma.done.wait (%p2629_p11), %s404_s9, 256  }
  0x8b   : > { %2439 = vsyncadd (%p2629_p11), %s404_s9, 4294967040  ;;  %s416_s25 = scalar_lea.vmem [#allocation9], %s2731_s22  ;;  %p2981_p3 = scmp.eq.s32.totalorder %s2568_s11, 0 }
  0x8d   : > { %2441 = dma.done.wait (%p2981_p3), [#allocation11], 1024   ;;  %p2982_p0 = pmov %p2981_p3 }
  0x8f   : > { %2443 = vsyncadd (%p2982_p0), [#allocation11], 4294966272  ;;  %p2983_p13 = pmov %p2982_p0 }
  0x90   : > { %p2984_p9 = pmov %p2982_p0 }
  0x91   : > { %2445 = dma.done.wait (%p2983_p13), [#allocation14], 1024  }
  0x92   : > { %2447 = vsyncadd (%p2984_p9), [#allocation14], 4294966272  ;;  %v2485_v0 = vmov 0.0   ;;  %vm2486_vm0 = vmmov 0   ;;  %v489_v1 = vld [vmem:[#allocation12 + $0x18] sm:$0xff]  ;;  %v488_v2 = vld [vmem:[#allocation12 + $0x10] sm:$0xff]  ;;  %v810_v26 = vlaneseq }
  0x93   : > { %1964 = vmatprep.subr.mxu0 %v2485_v0  ;;  %1972 = vmatprep.mubr.msk.f32.mxu0 %vm2486_vm0, %v2485_v0  ;;  %v487_v3 = vld [vmem:[#allocation12 + $0x8] sm:$0xff]  ;;  %v486_v4 = vld [vmem:[#allocation12] sm:$0xff]  ;;  %vm490_vm1 = vcmask 261120   ;;  %v648_v6 = vld [vmem:[#allocation10 + $0x18] sm:$0xff]  ;;  %vm732_vm2 = vcmask 64512   ;;  %s2487_s11 = smov 120  }
  0x94   : > { %1975 = vmatprep.subr.mxu1 %v2485_v0  ;;  %1983 = vmatprep.mubr.msk.f32.mxu1 %vm2486_vm0, %v2485_v0  ;;  %v485_v5 = vld [vmem:[%s407_s12] sm:$0xff]  ;;  %v647_v7 = vld [vmem:[#allocation10 + $0x10] sm:$0xff]  ;;  %v569_v11 = vld [vmem:[#allocation13 + $0x18] sm:$0xff]  ;;  %p478_p11 = scmp.lt.s32.totalorder %s2466_s30, 1  ;;  %v811_v28 = vshrl.u32 %v810_v26, 7  ;;  %v2488_v31 = vmov 0  }
  0x95   : > { %1965 = vmatpush3.msra.mxu0 %v489_v1  ;;  %v646_v8 = vld [vmem:[#allocation10 + $0x8] sm:$0xff]  ;;  %v645_v9 = vld [vmem:[#allocation10] sm:$0xff]  ;;  %v644_v10 = vld [vmem:[%s398_s24] sm:$0xff]  ;;  %1976 = vmatpush3.msra.mxu1 %v569_v11  ;;  %s2489_s4 = smov 112   ;;  %s2490_s23 = smov 104  }
  0x96   : > { %1966 = vmatprep.subr.mxu0 %v2485_v0  ;;  %1977 = vmatprep.subr.mxu1 %v2485_v0  ;;  %v568_v12 = vld [vmem:[#allocation13 + $0x10] sm:$0xff]  ;;  %v567_v13 = vld [vmem:[#allocation13 + $0x8] sm:$0xff]  ;;  %v566_v14 = vld [vmem:[#allocation13] sm:$0xff]  ;;  %s479_s18 = scalar_select %p478_p11, %s2466_s30, 1  ;;  %v812_v30 = vsub.s32 0, %v811_v28 }
  0x97   : > { %1967 = vmatpush3.msra.mxu0 %v488_v2  ;;  %1978 = vmatpush3.msra.mxu1 %v568_v12  ;;  %v565_v15 = vld [vmem:[%s416_s25] sm:$0xff]  ;;  %v727_v55 = vld [vmem:[#allocation15 + $0x8] sm:$0xff]  ;;  %v726_v60 = vld [vmem:[#allocation15] sm:$0xff]  ;;  %s1922_s16 = sshll.u32 %s2466_s30, 7  ;;  %s477_s6 = scalar_lea.vmem [#allocation16], %s2731_s22 }
  0x98   : > { %1968 = vmatprep.subr.mxu0 %v2485_v0  ;;  %1979 = vmatprep.subr.mxu1 %v2485_v0  ;;  %s480_s10 = scalar_lea.vmem %s2932_s3, %s479_s18  ;;  %s1709_s20 = sshll.u32 %s477_s6, 4  ;;  %s1710_s20 = int_to_ptr.vmem [resolvable:$true] %s1709_s20 }
  0x99   : > { %1969 = vmatpush3.msra.mxu0 %v487_v3  ;;  %1980 = vmatpush3.msra.mxu1 %v567_v13  ;;  %v730_v27 = vld [vmem:[%s480_s10] sm:$0x1]  ;;  %s2886_s27 = scalar_lea.hbm %s2937_s8, %s1922_s16  ;;  %s1695_s17 = scalar_lea.sflag [#allocation6], %s2728_s26 }
  0x9a   : > { %1970 = vmatprep.subr.mxu0 %v2485_v0  ;;  %1981 = vmatprep.subr.mxu1 %v2485_v0  ;;  %vm731_vm3 = vcmp.eq.s32.totalorder %v730_v27, 0  ;;  %s2382_s19 = scalar_lea.vmem %s1710_s20, 128  ;;  %p2985_p2 = scmp.ne.s32.totalorder %s2967_s21, 0 }
  0x9b   : > { %1971 = vmatpush3.msra.mxu0 %v486_v4  ;;  %1982 = vmatpush3.msra.mxu1 %v566_v14  ;;  %v809_v32 = vsel %vm731_vm3, 1, %v2488_v31  ;;  %p2383_p12 = scmp.ne.s32.totalorder %s1710_s20, %s2382_s19  ;;  %s2491_s30 = smov [#allocation16]  }
  0x9c   : > { %1973 = vmatmul.mubr.msk.f32.vlgmr.msra.gmra.mxu0 %vm490_vm1, %v485_v5  ;;  %1986 = vmatprep.subr.mxu0 %v2485_v0  ;;  %v2816_v33 = vrot.slane %v809_v32, %v812_v30  ;;  %s2386_s22 = sshll.u32 %s2491_s30, 4  ;;  %s2387_s22 = int_to_ptr.vmem [resolvable:$false] %s2386_s22 }
  0x9d   : > { %1987 = vmatpush3.msra.mxu0 %v648_v6  ;;  %1994 = vmatprep.mubr.msk.f32.mxu0 %vm2486_vm0, %v2485_v0  ;;  %p2384_p5 = pnand %p2383_p12, %p2985_p2  ;;  %s2388_s24 = scalar_lea.vmem %s2387_s22, 256 }
  0x9e   : > { %1988 = vmatprep.subr.mxu0 %v2485_v0  ;;  %1984 = vmatmul.mubr.msk.f32.vlgmr.msra.gmra.mxu1 %vm490_vm1, %v565_v15  ;;  %vm814_vm4 = vcmp.eq.s32.totalorder %v2816_v33, 1  ;;  %p2389_p1 = scmp.lt.s32.totalorder %s1710_s20, %s2387_s22  ;;  %p2390_p7 = scmp.lt.s32.totalorder %s2388_s24, %s2382_s19 }
  0x9f   : > { %1989 = vmatpush3.msra.mxu0 %v647_v7  ;;  %1997 = vmatprep.subr.mxu1 %v2485_v0  ;;  %p2385_p10 = pneg %p2384_p5 }
  0xa0   : > { %1990 = vmatprep.subr.mxu0 %v2485_v0  ;;  %1999 = vmatprep.mubr.msk.f32.mxu1 %vm2486_vm0, %v2485_v0  ;;  %p2391_p4 = por %p2390_p7, %p2389_p1 }
  0xa1   : > { %1991 = vmatpush3.msra.mxu0 %v646_v8 }
  0xa2   : > { %1992 = vmatprep.subr.mxu0 %v2485_v0  ;;  %p2392_p8 = pnand %p2391_p4, %p2385_p10 }
  0xa3   : > { %1993 = vmatpush3.msra.mxu0 %v645_v9 }
  0xa4   : > { %1995 = vmatmul.mubr.msk.f32.vlgmr.msra.gmra.mxu0 %vm490_vm1, %v644_v10  ;;  %2007 = vmatprep.subr.mxu0 %v2485_v0 }
  0xa5   : > { %2009 = vmatprep.mubr.msk.f32.mxu0 %vm2486_vm0, %v2485_v0 }
 0x15c   : > { %v560_v16 = vpop.f32.mrf.mxu0 }
 0x15d   : > { %564 = vst.msk [vmem:[#allocation2] sm:$0xff] %vm490_vm1, %v560_v16 }
 0x15e   : > { %v1974_v17 = vpop.f32.mrf.mxu0  ;;  %v639_v22 = vpop.f32.mrf.mxu1 }
 0x15f   : > { %643 = vst.msk [vmem:[#allocation3] sm:$0xff] %vm490_vm1, %v639_v22 }
 0x160   : > { %v1985_v23 = vpop.f32.mrf.mxu1 }
 0x164   : > { %v719_v18 = vpop.f32.mrf.mxu0  ;;  %v2786_v19 = vld [vmem:[#allocation2] sm:$0xff] }
 0x165   : > { %v2788_v20 = vmul.f32 0.35355338, %v719_v18  ;;  %902 = vrot.lane.b32.xlu0 %v2786_v19, %s2487_s11  ;;  %1998 = vmatpush3.xpose.msk.msra.mxu1 %vm732_vm2, %v2786_v19 }
 0x166   : > { %v1996_v21 = vpop.f32.mrf.mxu0  ;;  %2002 = vmatprep.subr.mxu1 %v2485_v0  ;;  %v2812_v29 = vld [vmem:[#allocation3] sm:$0xff] }
 0x168   : > { %2000 = vmatmul.mubr.msk.f32.vlgmr.msra.gmra.mxu1 %vm732_vm2, %v2788_v20 }
 0x169   : > { %900 = vrot.lane.b32.xlu0 %v2788_v20, %s2487_s11  ;;  %2004 = vmatprep.mubr.msk.f32.mxu1 %vm2486_vm0, %v2485_v0 }
 0x16a   : > { %2003 = vmatpush3.msra.mxu1 %v2812_v29 }
 0x16b   : > { %2012 = vmatprep.subr.mxu1 %v2485_v0 }
 0x1d7   : > { %v903_v24 = vpop.permute.xlu0 %902 }
 0x1d8   : > { %2008 = vmatpush3.xpose.msk.msra.mxu0 %vm732_vm2, %v903_v24 }
 0x1d9   : > { %2017 = vmatprep.subr.mxu0 %v2485_v0 }
 0x1db   : > { %v901_v25 = vpop.permute.xlu0 %900 }
 0x1dc   : > { %2010 = vmatmul.mubr.msk.f32.vlgmr.msra.gmra.mxu0 %vm732_vm2, %v901_v25 }
 0x1dd   : > { %2019 = vmatprep.mubr.msk.f32.mxu0 %vm2486_vm0, %v2485_v0  ;;  %2018 = vmatpush3.msra.mxu0 %v727_v55 }
 0x1de   : > { %2027 = vmatprep.subr.mxu0 %v2485_v0 }
 0x228   : > { %v805_v34 = vpop.f32.mrf.mxu1 }
 0x229   : > { %v815_v35 = vsel %vm814_vm4, -1e+09, %v805_v34 }
 0x22a   : > { %v2001_v36 = vpop.f32.mrf.mxu1  ;;  %v816_v37 = vsel %vm732_vm2, %v815_v35, -inf }
 0x22b   : > { %817 = vmax.xlane.f32.xlu1 %v816_v37 }
 0x29c   : > { %v974_v38 = vpop.f32.mrf.mxu0 }
 0x29d   : > { %v978_v39 = vsel %vm814_vm4, -1e+09, %v974_v38 }
 0x29e   : > { %v2011_v40 = vpop.f32.mrf.mxu0  ;;  %v979_v41 = vsel %vm732_vm2, %v978_v39, -inf }
 0x29f   : > { %980 = vmax.xlane.f32.xlu1 %v979_v41 }
 0x2b4   : > { %v818_v42 = vpop.xlane.xlu1 %817 }
 0x2b5   : > { %v819_v43 = vsub.f32 %v815_v35, %v818_v42 }
 0x2b7   : > { %v820_v44 = vmul.f32 1.442695, %v819_v43 }
 0x2b9   : > { %2178 = vpow2.f32 %v820_v44 }
 0x2c6   : > { %v2179_v45 = vpop.eup %2178 }
 0x2c7   : > { %v822_v46 = vsel %vm732_vm2, %v2179_v45, 0.0 }
 0x2c8   : > { %823 = vadd.xlane.f32.xlu0 %v822_v46 }
 0x2de   : > { %1303 = vrot.lane.b32.xlu0 %v2812_v29, %s2489_s4 }
 0x328   : > { %v981_v47 = vpop.xlane.xlu1 %980 }
 0x329   : > { %v982_v48 = vsub.f32 %v978_v39, %v981_v47 }
 0x32b   : > { %v983_v49 = vmul.f32 1.442695, %v982_v48 }
 0x32d   : > { %2180 = vpow2.f32 %v983_v49 }
 0x33a   : > { %v2181_v50 = vpop.eup %2180 }
 0x33b   : > { %v985_v51 = vsel %vm732_vm2, %v2181_v50, 0.0 }
 0x33c   : > { %986 = vadd.xlane.f32.xlu1 %v985_v51 }
 0x34d   : > { %991 = vrot.lane.b32.xlu1 %v2812_v29, %s2487_s11 }
 0x351   : > { %v824_v52 = vpop.xlane.xlu0 %823  ;;  %1215 = vrot.lane.b32.xlu1 %v2786_v19, %s2489_s4 }
 0x352   : > { %2182 = vrcp.f32 %v824_v52 }
 0x355   : > { %1213 = vrot.lane.b32.xlu1 %v2788_v20, %s2489_s4  ;;  %v1304_v62 = vpop.permute.xlu0 %1303 }
 0x35f   : > { %v2183_v53 = vpop.eup %2182 }
 0x360   : > { %v826_v54 = vmul.f32 %v2183_v53, %v2179_v45 }
 0x362   : > { %2005 = vmatmul.mubr.msk.f32.vlgmr.msra.gmra.mxu1 %vm732_vm2, %v826_v54 }
 0x363   : > { %2014 = vmatprep.mubr.msk.f32.mxu1 %vm2486_vm0, %v2485_v0 }
 0x3c5   : > { %v987_v56 = vpop.xlane.xlu1 %986 }
 0x3c6   : > { %2184 = vrcp.f32 %v987_v56 }
 0x3c9   : > { %v992_v57 = vpop.permute.xlu1 %991 }
 0x3ca   : > { %2013 = vmatpush3.msra.mxu1 %v992_v57 }
 0x3cb   : > { %2022 = vmatprep.subr.mxu1 %v2485_v0 }
 0x3cd   : > { %v1216_v1 = vpop.permute.xlu1 %1215 }
 0x3d1   : > { %v1214_v4 = vpop.permute.xlu1 %1213 }
 0x3d3   : > { %v2185_v58 = vpop.eup %2184 }
 0x3d4   : > { %v989_v59 = vmul.f32 %v2185_v58, %v2181_v50 }
 0x3d6   : > { %2015 = vmatmul.mubr.msk.f32.vlgmr.msra.gmra.mxu1 %vm732_vm2, %v989_v59 }
 0x3d7   : > { %2023 = vmatpush3.msra.mxu1 %v726_v60  ;;  %2024 = vmatprep.mubr.msk.f32.mxu1 %vm2486_vm0, %v2485_v0 }
 0x3d8   : > { %2032 = vmatprep.subr.mxu1 %v2485_v0 }
 0x422   : > { %v896_v61 = vpop.f32.mrf.mxu1 }
 0x423   : > { %2025 = vmatmul.mubr.msk.f32.vlgmr.msra.gmra.mxu1 %vm732_vm2, %v896_v61 }
 0x424   : > { %2033 = vmatpush3.msra.mxu1 %v1304_v62  ;;  %v2006_v63 = vpop.f32.mrf.mxu1  ;;  %2034 = vmatprep.mubr.msk.f32.mxu1 %vm2486_vm0, %v2485_v0 }
 0x425   : > { %2042 = vmatprep.subr.mxu1 %v2485_v0 }
 0x496   : > { %v1063_v2 = vpop.f32.mrf.mxu1 }
 0x497   : > { %2020 = vmatmul.mubr.msk.f32.vlgmr.msra.gmra.mxu0 %vm732_vm2, %v1063_v2 }
 0x498   : > { %2028 = vmatpush3.xpose.msk.msra.mxu0 %vm732_vm2, %v1216_v1  ;;  %v2016_v3 = vpop.f32.mrf.mxu1  ;;  %2029 = vmatprep.mubr.msk.f32.mxu0 %vm2486_vm0, %v2485_v0 }
 0x499   : > { %2037 = vmatprep.subr.mxu0 %v2485_v0 }
 0x49b   : > { %2030 = vmatmul.mubr.msk.f32.vlgmr.msra.gmra.mxu0 %vm732_vm2, %v1214_v4 }
 0x49c   : > { %2039 = vmatprep.mubr.msk.f32.mxu0 %vm2486_vm0, %v2485_v0 }
 0x4e3   : > { %v1209_v5 = vpop.f32.mrf.mxu1 }
 0x4e5   : > { %v2026_v6 = vpop.f32.mrf.mxu1 }
 0x557   : > { %v1136_v7 = vpop.f32.mrf.mxu0 }
 0x558   : > { %v1210_v33 = vadd.f32 %v1209_v5, %v1136_v7 }
 0x559   : > { %v2021_v8 = vpop.f32.mrf.mxu0 }
 0x55b   : > { %v1287_v9 = vpop.f32.mrf.mxu0 }
 0x55c   : > { %v1291_v10 = vsel %vm814_vm4, -1e+09, %v1287_v9 }
 0x55d   : > { %v2031_v11 = vpop.f32.mrf.mxu0  ;;  %v1292_v12 = vsel %vm732_vm2, %v1291_v10, -inf }
 0x55e   : > { %1293 = vmax.xlane.f32.xlu1 %v1292_v12 }
 0x5e7   : > { %v1294_v13 = vpop.xlane.xlu1 %1293 }
 0x5e8   : > { %v1295_v14 = vsub.f32 %v1291_v10, %v1294_v13 }
 0x5ea   : > { %v1296_v15 = vmul.f32 1.442695, %v1295_v14 }
 0x5ec   : > { %2186 = vpow2.f32 %v1296_v15 }
 0x5f9   : > { %v2187_v16 = vpop.eup %2186 }
 0x5fa   : > { %v1298_v17 = vsel %vm732_vm2, %v2187_v16, 0.0 }
 0x5fb   : > { %1299 = vadd.xlane.f32.xlu0 %v1298_v17 }
 0x611   : > { %1455 = vrot.lane.b32.xlu0 %v2786_v19, %s2490_s23  ;;  %v728_v19 = vld [vmem:[#allocation15 + $0x10] sm:$0xff] }
 0x612   : > { %2038 = vmatpush3.msra.mxu0 %v728_v19 }
 0x613   : > { %2047 = vmatprep.subr.mxu0 %v2485_v0 }
 0x615   : > { %1453 = vrot.lane.b32.xlu0 %v2788_v20, %s2490_s23 }
 0x684   : > { %v1300_v18 = vpop.xlane.xlu0 %1299 }
 0x685   : > { %2188 = vrcp.f32 %v1300_v18 }
 0x688   : > { %v1456_v22 = vpop.permute.xlu0 %1455 }
 0x68c   : > { %v1454_v24 = vpop.permute.xlu0 %1453 }
 0x692   : > { %v2189_v21 = vpop.eup %2188 }
 0x693   : > { %v1302_v23 = vmul.f32 %v2189_v21, %v2187_v16 }
 0x695   : > { %2035 = vmatmul.mubr.msk.f32.vlgmr.msra.gmra.mxu1 %vm732_vm2, %v1302_v23 }
 0x696   : > { %2043 = vmatpush3.xpose.msk.msra.mxu1 %vm732_vm2, %v1456_v22  ;;  %2044 = vmatprep.mubr.msk.f32.mxu1 %vm2486_vm0, %v2485_v0 }
 0x697   : > { %2052 = vmatprep.subr.mxu1 %v2485_v0 }
 0x699   : > { %2045 = vmatmul.mubr.msk.f32.vlgmr.msra.gmra.mxu1 %vm732_vm2, %v1454_v24 }
 0x69a   : > { %2054 = vmatprep.mubr.msk.f32.mxu1 %vm2486_vm0, %v2485_v0 }
 0x755   : > { %v1375_v20 = vpop.f32.mrf.mxu1 }
 0x756   : > { %2040 = vmatmul.mubr.msk.f32.vlgmr.msra.gmra.mxu0 %vm732_vm2, %v1375_v20 }
 0x757   : > { %v2036_v25 = vpop.f32.mrf.mxu1  ;;  %2049 = vmatprep.mubr.msk.f32.mxu0 %vm2486_vm0, %v2485_v0  ;;  %v729_v0 = vld [vmem:[#allocation15 + $0x18] sm:$0xff] }
 0x758   : > { %2053 = vmatpush3.msra.mxu1 %v729_v0 }
 0x759   : > { %v1527_v26 = vpop.f32.mrf.mxu1 }
 0x75a   : > { %v1531_v27 = vsel %vm814_vm4, -1e+09, %v1527_v26 }
 0x75b   : > { %v2046_v28 = vpop.f32.mrf.mxu1  ;;  %v1532_v30 = vsel %vm732_vm2, %v1531_v27, -inf }
 0x75c   : > { %1533 = vmax.xlane.f32.xlu0 %v1532_v30 }
 0x7e5   : > { %v1534_v31 = vpop.xlane.xlu0 %1533 }
 0x7e6   : > { %v1535_v32 = vsub.f32 %v1531_v27, %v1534_v31 }
 0x7e8   : > { %v1536_v34 = vmul.f32 1.442695, %v1535_v32 }
 0x7ea   : > { %2190 = vpow2.f32 %v1536_v34 }
 0x7f7   : > { %v2191_v35 = vpop.eup %2190 }
 0x7f8   : > { %v1538_v36 = vsel %vm732_vm2, %v2191_v35, 0.0 }
 0x7f9   : > { %1539 = vadd.xlane.f32.xlu1 %v1538_v36 }
 0x80a   : > { %1543 = vrot.lane.b32.xlu1 %v2812_v29, %s2490_s23 }
 0x816   : > { %v1448_v37 = vpop.f32.mrf.mxu0 }
 0x817   : > { %v1452_v38 = vadd.f32 %v1448_v37, %v1210_v33 }
 0x818   : > { %v2041_v39 = vpop.f32.mrf.mxu0 }
 0x882   : > { %v1540_v40 = vpop.xlane.xlu1 %1539 }
 0x883   : > { %2192 = vrcp.f32 %v1540_v40 }
 0x886   : > { %v1544_v41 = vpop.permute.xlu1 %1543 }
 0x887   : > { %2048 = vmatpush3.msra.mxu0 %v1544_v41 }
 0x890   : > { %v2193_v42 = vpop.eup %2192 }
 0x891   : > { %v1542_v43 = vmul.f32 %v2193_v42, %v2191_v35 }
 0x893   : > { %2050 = vmatmul.mubr.msk.f32.vlgmr.msra.gmra.mxu0 %vm732_vm2, %v1542_v43 }
 0x953   : > { %v1615_v44 = vpop.f32.mrf.mxu0 }
 0x954   : > { %2055 = vmatmul.mubr.msk.f32.vlgmr.msra.gmra.mxu1 %vm732_vm2, %v1615_v44 }
 0x955   : > { %v2051_v29 = vpop.f32.mrf.mxu0 }
 0xa14   : > { %v1688_v45 = vpop.f32.mrf.mxu1 }
 0xa15   : > { %v1692_v46 = vadd.f32 %v1688_v45, %v1452_v38 }
 0xa16   : > { %v2056_v47 = vpop.f32.mrf.mxu1 }
 0xa17   : > { %1693 = vst.msk [vmem:[%s477_s6] sm:$0xff] %vm490_vm1, %v1692_v46 }
 0xa18   : > { %2395 = shalt.err (!%p2392_p8)
}
 0xa19   : > { %s2396_s5 = scalar_lea.hbm %s2886_s27, 128  ;;  %s2400_s12 = scalar_lea.hbm %s2937_s8, 256 }
 0xa1a   : > { %p2397_p6 = scmp.ne.s32.totalorder %s2886_s27, %s2396_s5  ;;  %p2401_p13 = scmp.lt.s32.totalorder %s2886_s27, %s2937_s8 }
 0xa1b   : > { %p2402_p9 = scmp.lt.s32.totalorder %s2400_s12, %s2396_s5 }
 0xa1c   : > { %p2398_p3 = pnand %p2397_p6, %p2985_p2 }
 0xa1d   : > { %p2403_p11 = por %p2402_p9, %p2401_p13 }
 0xa1e   : > { %p2399_p0 = pneg %p2398_p3 }
 0xa20   : > { %p2404_p12 = pnand %p2403_p11, %p2399_p0 }
 0xa22   : > { %2407 = shalt.err (!%p2404_p12)
}
 0xa23   : > { %2079 = dma.vmem_to_hbm [thread:$0]  (%p2985_p2), %s1710_s20, 128, %s2886_s27, %s1695_s17  }
 0xa24 PF: > { %s2986_s18 = sld [smem:[#allocation22_spill]] }
 0xa25   : > { %s2987_s1 = sld [smem:[#allocation27_spill]] }
 0xa26   : > { %s2988_s14 = sld [smem:[#allocation24_spill]] }
 0xa2a   : > { %s1721_s10 = sand.u32 1, %s2986_s18  }
 0xa2b   : > { %p2989_p5 = scmp.ne.s32.totalorder %s2987_s1, 0  ;;  %s1722_s4 = scalar_lea.sflag [#allocation6], %s1721_s10 }
 0xa2c   : > { %p2990_p10 = scmp.ge.s32.totalorder %s2988_s14, 2 }
 0xa2e   : > { %p2105_p1 = pnand %p2990_p10, %p2989_p5 }
 0xa30   : > { %p2106_p7 = pneg %p2105_p1 }
 0xa32   : > { %2449 = dma.done.wait (%p2106_p7), %s1722_s4, 128  }
 0xa33   : > { %2451 = vsyncadd (%p2106_p7), %s1722_s4, 4294967168  ;;  %s29_s10 = sadd.s32 1, %s2988_s14   ;;  %s2991_s21 = sld [smem:[#allocation26_spill]] }
 0xa34   : > { %p26_p4 = scmp.ge.s32.totalorder %s29_s10, 4   ;;  %s2992_s30 = sld [smem:[#allocation23_spill]] }
 0xa35   : > { %s2993_s9 = sld [smem:[#allocation25_spill]]  ;;  %s2994_s27 = smov %s2458_s28 }
 0xa36   : > { %s2995_s28 = smov %s2462_s29  ;;  %28 = sbr.rel (!%p26_p4) target bundleno = 15 (0xf), region = 144 }
 0xa39   : > { %s2996_s29 = smov %s2991_s21 }
 0xa3b   :  { %1727 = vsyncpa [#allocation5], 1 }
 0xa3c   :  { %1729 = vsyncpa [#allocation5 + $0x1], 1 }
 0xa3d   :  { %1730 = vsyncpa [#allocation8], 1 }
 0xa3e   :  { %1732 = vsyncpa [#allocation8 + $0x1], 1 }
 0xa3f   :  { %1733 = vsyncpa [#allocation11], 1 }
 0xa40   :  { %1734 = vsyncpa [#allocation14], 1 }
 0xa41   :  { %1735 = vsyncpa [#allocation6], 1 }
 0xa42   :  { %1737 = vsyncpa [#allocation6 + $0x1], 1 }

</bundles_post_ra>
